<compile_context>
chip_gen: v6e
topology: v6e:2x2x1
jax: 0.10.0
libtpu: 0.0.40
codegen_flags: <defaults>
</compile_context>

<pallas_src>
import jax
import jax.numpy as jnp
from jax.experimental import pallas as pl
from jax.experimental.pallas import tpu as pltpu

LANE = 128


def _round_up(v, m):
    return (v + m - 1) // m * m


# -----------------------------------------------------------------------------
# Pallas kernel: one graph-group per grid step.  All blocks live in VMEM.
# -----------------------------------------------------------------------------
def gnn_kernel(a_ref, x_ref, wc_ref, bc_ref, p_ref, wl_ref, bl_ref, out_ref):
    # (1) X @ W_conv on the MXU: bf16 operands in canonical (M,K)x(K,N)
    #     layout, f32 accumulation.
    xw = jnp.dot(x_ref[...], wc_ref[...],
                 preferred_element_type=jnp.float32)              # (TN, HP) f32

    # (2) GCN aggregation for this graph group.  A_norm is block-diagonal
    #     across groups (graphs never span a group), so the (TN, TN) diagonal
    #     block is exact.  Then conv bias + ReLU on the VPU.
    h = jnp.dot(a_ref[...], xw, preferred_element_type=jnp.float32) + bc_ref[...]
    h = jnp.maximum(h, 0.0)

    # (3) global_mean_pool as a (TB, TN) @ (TN, HP) matmul (pool matrix is
    #     block-diagonal as well).
    pooled = jnp.dot(p_ref[...], h, preferred_element_type=jnp.float32)

    # (4) Final Linear on 128-lane padded slabs -> lane-dense output store.
    out_ref[...] = (
        jnp.dot(pooled, wl_ref[...], preferred_element_type=jnp.float32)
        + bl_ref[...])


# -----------------------------------------------------------------------------
# Wrapper: padding / lane-dense layouts / grid construction.
# Assumes graphs are laid out contiguously in node order and no graph spans a
# `tile_nodes` boundary (true by construction for the demo; use tile_nodes=N
# for fully general layouts).
# -----------------------------------------------------------------------------
def gnn_forward(a_norm, x, w_conv, b_conv, pool_mat, w_lin, b_lin,
                *, tile_nodes=128):
    N, F = x.shape
    B = pool_mat.shape[0]
    H = w_conv.shape[1]
    C = w_lin.shape[1]
    HP = _round_up(H, LANE)   # hidden padded to a full lane width
    CP = _round_up(C, LANE)   # classes padded to a full lane width

    # Grid over contiguous graph groups (node-row tiles).
    TN = min(tile_nodes, N)
    assert N % TN == 0, "node count must tile evenly"
    G = N // TN
    assert B % G == 0, "graphs must distribute evenly over node tiles"
    TB = B // G
    assert G == 1 or (TN % LANE == 0 and TB % 8 == 0), "tile not (8,128)-aligned"

    # Zero-padded, lane-dense parameter layouts (built once, outside kernel).
    wcp = jnp.zeros((F, HP), jnp.float32).at[:, :H].set(w_conv)
    bcp = jnp.zeros((1, HP), jnp.float32).at[0, :H].set(b_conv)
    wlp = jnp.zeros((HP, CP), jnp.float32).at[:H, :C].set(w_lin)
    blp = jnp.zeros((1, CP), jnp.float32).at[0, :C].set(b_lin)

    # bf16 inputs for the large X @ W matmul (f32 accumulation in the kernel).
    x_bf = x.astype(jnp.bfloat16)
    wcp_bf = wcp.astype(jnp.bfloat16)

    flops = G * (2 * TN * F * HP + 2 * TN * TN * HP
                 + 2 * TB * TN * HP + 2 * TB * HP * CP)
    bytes_accessed = (G * (4 * TN * TN + 2 * TN * F + 4 * TB * TN + 4 * TB * CP)
                      + 2 * F * HP + 4 * HP + 4 * HP * CP + 4 * CP)

    out = pl.pallas_call(
        gnn_kernel,
        out_shape=jax.ShapeDtypeStruct((B, CP), jnp.float32),
        grid_spec=pltpu.PrefetchScalarGridSpec(
            num_scalar_prefetch=0,
            grid=(G,),
            in_specs=[
                pl.BlockSpec((TN, TN), lambda g: (g, g)),   # diag block of A_norm (f32)
                pl.BlockSpec((TN, F), lambda g: (g, 0)),    # node-feature rows (bf16)
                pl.BlockSpec((F, HP), lambda g: (0, 0)),    # W_conv padded (bf16), resident
                pl.BlockSpec((1, HP), lambda g: (0, 0)),    # conv bias (padded), resident
                pl.BlockSpec((TB, TN), lambda g: (g, g)),   # diag block of pool matrix
                pl.BlockSpec((HP, CP), lambda g: (0, 0)),   # W_lin (padded), resident
                pl.BlockSpec((1, CP), lambda g: (0, 0)),    # lin bias (padded), resident
            ],
            out_specs=pl.BlockSpec((TB, CP), lambda g: (g, 0)),
        ),
        compiler_params=pltpu.CompilerParams(
            dimension_semantics=("parallel",),        # shard graph groups (v7x megacore)
            vmem_limit_bytes=32 * 1024 * 1024,        # explicit, safe on v5e/v6e/v7x
        ),
        cost_estimate=pl.CostEstimate(
            flops=flops, transcendentals=0, bytes_accessed=bytes_accessed),
    )(a_norm, x_bf, wcp_bf, bcp, pool_mat, wlp, blp)

    return out[:, :C]   # drop the lane padding outside the kernel


# -----------------------------------------------------------------------------
# Plain-JAX glue: graph preprocessing + deterministic parameter initialization
# -----------------------------------------------------------------------------
def build_gcn_norm_adj(edge_index, num_nodes):
    """Dense symmetric-normalized adjacency with self-loops: D^-1/2 (A+I) D^-1/2.
    Duplicate edges are deduplicated by .set(); matches PyG for simple graphs."""
    src, dst = edge_index
    a = jnp.zeros((num_nodes, num_nodes), jnp.float32).at[dst, src].set(1.0)
    a = a + jnp.eye(num_nodes, dtype=jnp.float32)
    deg = a.sum(axis=1)
    dinv = jnp.where(deg > 0, 1.0 / jnp.sqrt(deg), 0.0)
    return dinv[:, None] * a * dinv[None, :]


def build_mean_pool_matrix(batch, num_graphs):
    """P[b, i] = 1/|graph b| if node i belongs to graph b, else 0."""
    one_hot = (batch[None, :] == jnp.arange(num_graphs)[:, None]).astype(jnp.float32)
    counts = one_hot.sum(axis=1, keepdims=True)
    return one_hot / jnp.maximum(counts, 1.0)


def init_params(key, in_channels, hidden_channels, n_classes):
    k1, k2, k3 = jax.random.split(key, 3)
    # GCNConv internal linear: glorot-uniform weight, zero bias.
    limit = (6.0 / (in_channels + hidden_channels)) ** 0.5
    w_conv = jax.random.uniform(
        k1, (in_channels, hidden_channels), jnp.float32, -limit, limit)
    b_conv = jnp.zeros((hidden_channels,), jnp.float32)
    # torch.nn.Linear-style init: U(-1/sqrt(fan_in), 1/sqrt(fan_in)).
    bound = 1.0 / (hidden_channels ** 0.5)
    w_lin = jax.random.uniform(
        k2, (hidden_channels, n_classes), jnp.float32, -bound, bound)
    b_lin = jax.random.uniform(k3, (n_classes,), jnp.float32, -bound, bound)
    return w_conv, b_conv, w_lin, b_lin


if __name__ == "__main__":
    # Config: gnn_type='GCNConv', gnn_readout='mean'
    IN_CHANNELS = 3 * 384        # fixed by the module: 1152
    HIDDEN = 32
    N_CLASSES = 4
    NODES_PER_GRAPH = 8
    NUM_GRAPHS = 32              # batch many graphs into one pallas_call
    NUM_NODES = NUM_GRAPHS * NODES_PER_GRAPH   # 256 -> grid of 2 graph groups

    key = jax.random.PRNGKey(0)
    k_x, k_p = jax.random.split(key)

    # Node features: (256, 1152)
    x = jax.random.normal(k_x, (NUM_NODES, IN_CHANNELS), jnp.float32)

    # Deterministic edge_index: bidirectional ring within each 8-node graph.
    g_idx = jnp.arange(NUM_GRAPHS, dtype=jnp.int32)
    n_idx = jnp.arange(NODES_PER_GRAPH, dtype=jnp.int32)
    src = (g_idx[:, None] * NODES_PER_GRAPH + n_idx[None, :]).reshape(-1)
    dst = (g_idx[:, None] * NODES_PER_GRAPH
           + (n_idx[None, :] + 1) % NODES_PER_GRAPH).reshape(-1)
    edge_index = jnp.stack(
        [jnp.concatenate([src, dst]), jnp.concatenate([dst, src])], axis=0)

    # Graph-membership vector for pooling (graphs contiguous in node order).
    batch = jnp.repeat(jnp.arange(NUM_GRAPHS, dtype=jnp.int32), NODES_PER_GRAPH)

    # Glue: dense normalized adjacency + mean-pool matrix.
    a_norm = build_gcn_norm_adj(edge_index, NUM_NODES)
    pool_mat = build_mean_pool_matrix(batch, NUM_GRAPHS)

    # Deterministic parameters.
    w_conv, b_conv, w_lin, b_lin = init_params(k_p, IN_CHANNELS, HIDDEN, N_CLASSES)

    out = gnn_forward(a_norm, x, w_conv, b_conv, pool_mat, w_lin, b_lin)
    jax.block_until_ready(out)

    # Reference in plain JAX.  The kernel feeds bf16 X / W_conv into the MXU
    # (f32 accumulation), so the reference uses the same bf16-rounded inputs;
    # tolerance loosened accordingly (spec math itself is unchanged).
    hi = jax.lax.Precision.HIGHEST
    x_q = x.astype(jnp.bfloat16).astype(jnp.float32)
    w_q = w_conv.astype(jnp.bfloat16).astype(jnp.float32)
    ref = jnp.maximum(
        jnp.dot(a_norm, jnp.dot(x_q, w_q, precision=hi), precision=hi)
        + b_conv[None, :], 0.0)
    ref = jnp.dot(pool_mat, ref, precision=hi)
    ref = jnp.dot(ref, w_lin, precision=hi) + b_lin[None, :]

    assert out.shape == (NUM_GRAPHS, N_CLASSES)
    assert jnp.allclose(out, ref, atol=2e-2, rtol=2e-2), \
        float(jnp.max(jnp.abs(out - ref)))

    print("KERNEL_OK")
</pallas_src>

<mosaic_0001>
module attributes {stable_mosaic.version = 11 : i64} {
  func.func @gnn_kernel(%arg0: i32, %arg1: memref<128x128xf32, #tpu.memory_space<vmem>>, %arg2: memref<128x1152xbf16, #tpu.memory_space<vmem>>, %arg3: memref<1152x128xbf16, #tpu.memory_space<vmem>>, %arg4: memref<1x128xf32, #tpu.memory_space<vmem>>, %arg5: memref<16x128xf32, #tpu.memory_space<vmem>>, %arg6: memref<128x128xf32, #tpu.memory_space<vmem>>, %arg7: memref<1x128xf32, #tpu.memory_space<vmem>>, %arg8: memref<16x128xf32, #tpu.memory_space<vmem>>) attributes {dimension_semantics = [#tpu.dimension_semantics<parallel>], iteration_bounds = array<i64: 2>, scalar_prefetch = 0 : i64, scratch_operands = 0 : i64, tpu.core_type = #tpu.core_type<tc>, window_params = [{transform_indices = @transform_0, window_bounds = array<i64: 128, 128>}, {transform_indices = @transform_1, window_bounds = array<i64: 128, 1152>}, {pipeline_mode = #tpu.pipeline_mode<synchronous>, transform_indices = @transform_2, window_bounds = array<i64: 1152, 128>}, {pipeline_mode = #tpu.pipeline_mode<synchronous>, transform_indices = @transform_3, window_bounds = array<i64: 1, 128>}, {transform_indices = @transform_4, window_bounds = array<i64: 16, 128>}, {pipeline_mode = #tpu.pipeline_mode<synchronous>, transform_indices = @transform_5, window_bounds = array<i64: 128, 128>}, {pipeline_mode = #tpu.pipeline_mode<synchronous>, transform_indices = @transform_6, window_bounds = array<i64: 1, 128>}, {transform_indices = @transform_7, window_bounds = array<i64: 16, 128>}]} {
    %c0 = arith.constant 0 : index
    %c0_0 = arith.constant 0 : index
    %0 = vector.load %arg2[%c0, %c0_0] : memref<128x1152xbf16, #tpu.memory_space<vmem>>, vector<128x1152xbf16>
    %c0_1 = arith.constant 0 : index
    %c0_2 = arith.constant 0 : index
    %1 = vector.load %arg3[%c0_1, %c0_2] : memref<1152x128xbf16, #tpu.memory_space<vmem>>, vector<1152x128xbf16>
    %cst = arith.constant dense<0.000000e+00> : vector<128x128xf32>
    %2 = tpu.matmul %0, %1, %cst {dimension_numbers = #tpu.dot_dimension_numbers<[1], [0], [0], [1], [0, 0, 1, 1], [], []>} : vector<128x1152xbf16>, vector<1152x128xbf16>, vector<128x128xf32> -> vector<128x128xf32>
    %c0_3 = arith.constant 0 : index
    %c0_4 = arith.constant 0 : index
    %3 = vector.load %arg1[%c0_3, %c0_4] : memref<128x128xf32, #tpu.memory_space<vmem>>, vector<128x128xf32>
    %cst_5 = arith.constant dense<0.000000e+00> : vector<128x128xf32>
    %4 = tpu.matmul %3, %2, %cst_5 {dimension_numbers = #tpu.dot_dimension_numbers<[1], [0], [0], [1], [0, 0, 1, 1], [], []>} : vector<128x128xf32>, vector<128x128xf32>, vector<128x128xf32> -> vector<128x128xf32>
    %c0_6 = arith.constant 0 : index
    %c0_7 = arith.constant 0 : index
    %5 = vector.load %arg4[%c0_6, %c0_7] : memref<1x128xf32, #tpu.memory_space<vmem>>, vector<1x128xf32>
    %6 = vector.broadcast %5 : vector<1x128xf32> to vector<128x128xf32>
    %7 = arith.addf %4, %6 : vector<128x128xf32>
    %cst_8 = arith.constant 0.000000e+00 : f32
    %8 = vector.broadcast %cst_8 : f32 to vector<128x128xf32>
    %9 = arith.maximumf %7, %8 : vector<128x128xf32>
    %c0_9 = arith.constant 0 : index
    %c0_10 = arith.constant 0 : index
    %10 = vector.load %arg5[%c0_9, %c0_10] : memref<16x128xf32, #tpu.memory_space<vmem>>, vector<16x128xf32>
    %cst_11 = arith.constant dense<0.000000e+00> : vector<16x128xf32>
    %11 = tpu.matmul %10, %9, %cst_11 {dimension_numbers = #tpu.dot_dimension_numbers<[1], [0], [0], [1], [0, 0, 1, 1], [], []>} : vector<16x128xf32>, vector<128x128xf32>, vector<16x128xf32> -> vector<16x128xf32>
    %c0_12 = arith.constant 0 : index
    %c0_13 = arith.constant 0 : index
    %12 = vector.load %arg6[%c0_12, %c0_13] : memref<128x128xf32, #tpu.memory_space<vmem>>, vector<128x128xf32>
    %cst_14 = arith.constant dense<0.000000e+00> : vector<16x128xf32>
    %13 = tpu.matmul %11, %12, %cst_14 {dimension_numbers = #tpu.dot_dimension_numbers<[1], [0], [0], [1], [0, 0, 1, 1], [], []>} : vector<16x128xf32>, vector<128x128xf32>, vector<16x128xf32> -> vector<16x128xf32>
    %c0_15 = arith.constant 0 : index
    %c0_16 = arith.constant 0 : index
    %14 = vector.load %arg7[%c0_15, %c0_16] : memref<1x128xf32, #tpu.memory_space<vmem>>, vector<1x128xf32>
    %15 = vector.broadcast %14 : vector<1x128xf32> to vector<16x128xf32>
    %16 = arith.addf %13, %15 : vector<16x128xf32>
    %c0_17 = arith.constant 0 : index
    %c0_18 = arith.constant 0 : index
    %17 = vector.load %arg8[%c0_17, %c0_18] : memref<16x128xf32, #tpu.memory_space<vmem>>, vector<16x128xf32>
    tpu.vector_store %arg8[%c0_17, %c0_18], %16 {strides = array<i32>} : memref<16x128xf32, #tpu.memory_space<vmem>>, vector<16x128xf32>,
    return
  }
  func.func @transform_0(%arg0: i32) -> (i32, i32) {
    %c0_i32 = arith.constant 0 : i32
    return %arg0, %arg0 : i32, i32
  }
  func.func @transform_1(%arg0: i32) -> (i32, i32) {
    %c0_i32 = arith.constant 0 : i32
    %c0_i32_0 = arith.constant 0 : i32
    return %arg0, %c0_i32 : i32, i32
  }
  func.func @transform_2(%arg0: i32) -> (i32, i32) {
    %c0_i32 = arith.constant 0 : i32
    %c0_i32_0 = arith.constant 0 : i32
    %c0_i32_1 = arith.constant 0 : i32
    return %c0_i32, %c0_i32_0 : i32, i32
  }
  func.func @transform_3(%arg0: i32) -> (i32, i32) {
    %c0_i32 = arith.constant 0 : i32
    %c0_i32_0 = arith.constant 0 : i32
    %c0_i32_1 = arith.constant 0 : i32
    return %c0_i32, %c0_i32_0 : i32, i32
  }
  func.func @transform_4(%arg0: i32) -> (i32, i32) {
    %c0_i32 = arith.constant 0 : i32
    return %arg0, %arg0 : i32, i32
  }
  func.func @transform_5(%arg0: i32) -> (i32, i32) {
    %c0_i32 = arith.constant 0 : i32
    %c0_i32_0 = arith.constant 0 : i32
    %c0_i32_1 = arith.constant 0 : i32
    return %c0_i32, %c0_i32_0 : i32, i32
  }
  func.func @transform_6(%arg0: i32) -> (i32, i32) {
    %c0_i32 = arith.constant 0 : i32
    %c0_i32_0 = arith.constant 0 : i32
    %c0_i32_1 = arith.constant 0 : i32
    return %c0_i32, %c0_i32_0 : i32, i32
  }
  func.func @transform_7(%arg0: i32) -> (i32, i32) {
    %c0_i32 = arith.constant 0 : i32
    %c0_i32_0 = arith.constant 0 : i32
    return %arg0, %c0_i32 : i32, i32
  }
}

</mosaic_0001>

<bundles_post_ra>
// kernel: tpu_custom_call.1
= control target key start
LH: loop header
LB: loop body
LE: loop exit
PB: predicated region body
PF: predicated region fallthrough
CT: control target
= control target key end

     0   :  { %s4296_s0 = inlined_call_operand.hbm [shape: f32[256,256], index: 0, kind: input, shape index: {}]   ;;  %s4297_s1 = inlined_call_operand.hbm [shape: bf16[256,1152], index: 1, kind: input, shape index: {}]   ;;  %s4298_s2 = inlined_call_operand.hbm [shape: bf16[1152,128], index: 2, kind: input, shape index: {}]   ;;  %s4299_s3 = inlined_call_operand.vmem [shape: f32[1,128], index: 3, kind: input, shape index: {}]   ;;  %s4300_s4 = inlined_call_operand.hbm [shape: f32[32,256], index: 4, kind: input, shape index: {}]   ;;  %s4301_s5 = inlined_call_operand.hbm [shape: f32[128,128], index: 5, kind: input, shape index: {}]   ;;  %s4302_s6 = inlined_call_operand.vmem [shape: f32[1,128], index: 6, kind: input, shape index: {}]   ;;  %s4303_s7 = inlined_call_operand.hbm [shape: f32[32,128], index: 7, kind: output, shape index: {}]  }
   0x1   :  { %4329 = sst [smem:[#allocation42_spill]] %s4296_s0 }
   0x2   :  { %4330 = sst [smem:[#allocation43_spill]] %s4297_s1 }
   0x3   :  { %4331 = sst [smem:[#allocation44_spill]] %s4298_s2 }
   0x4   :  { %4332 = sst [smem:[#allocation45_spill]] %s4301_s5 }
   0x5   :  { %4333 = sst [smem:[#allocation46_spill]] %s4303_s7 }
   0x6   :  { %12 = vsyncpa [#allocation3], 0 }
   0x7   :  { %14 = vsyncpa [#allocation3 + $0x1], 0 }
   0x8   :  { %15 = vsyncpa [#allocation6], 0 }
   0x9   :  { %17 = vsyncpa [#allocation6 + $0x1], 0 }
   0xa   :  { %18 = vsyncpa [#allocation9], 0 }
   0xb   :  { %20 = vsyncpa [#allocation9 + $0x1], 0 }
   0xc   :  { %21 = vsyncpa [#allocation4], 0 }
   0xd   :  { %23 = vsyncpa [#allocation4 + $0x1], 0  ;;  %s3704_s24 = smov 0   ;;  %s3706_s25 = smov 0  }
   0xe   :  { %s3708_s26 = smov 0   ;;  %s3710_s27 = smov 0  }
   0xf   :  { %s3712_s28 = smov 0   ;;  %s3714_s29 = smov 0  }
  0x10   :  { %s3716_s30 = smov 0  }
  0x11 LB: > { %4334 = sst [smem:[#allocation18_spill]] %s3623_s24  ;;  %s3738_s8 = sadd.s32 4294967295, %s3647_s30   ;;  %s3647_s30 = sphi %s3716_s30, %s4411_s30   ;;  %s3643_s29 = sphi %s3714_s29, %s4415_s29   ;;  %s3639_s28 = sphi %s3712_s28, %s4419_s28   ;;  %s3635_s27 = sphi %s3710_s27, %s4418_s27   ;;  %s3631_s26 = sphi %s3708_s26, %s4413_s26   ;;  %s3627_s25 = sphi %s3706_s25, %s4417_s25   ;;  %s3623_s24 = sphi %s3704_s24, %s4416_s24  }
  0x12   : > { %4335 = sst [smem:[#allocation19_spill]] %s3631_s26  ;;  %s2444_s9 = sadd.s32 4294967294, %s3647_s30  }
  0x13   : > { %4336 = sst [smem:[#allocation20_spill]] %s3643_s29  ;;  %p51_p0 = scmp.ne.s32.totalorder %s3639_s28, %s3635_s27 }
  0x14   : > { %p4304_p1 = scmp.eq.s32.totalorder %s3738_s8, 0  ;;  %p77_p2 = scmp.ne.s32.totalorder %s3627_s25, %s3623_s24 }
  0x15   : > { %p219_p5 = scmp.eq.s32.totalorder %s2444_s9, 1  ;;  %p2445_p7 = scmp.ge.s32.totalorder %s3647_s30, 1 }
  0x16   : > { %p3748_p4 = por %p4304_p1, %p51_p0  ;;  %p3754_p6 = por %p77_p2, %p4304_p1 }
  0x17   : > { %p3759_p8 = por %p219_p5, %p77_p2  ;;  %p226_p9 = scmp.lt.s32.totalorder %s3647_s30, 3 }
  0x18   : > { %s4337_s10 = scalar_select %p3748_p4, 1, 0 }
  0x19   : > { %s4338_s11 = scalar_select %p3754_p6, 1, 0 }
  0x1a   : > { %s4339_s12 = scalar_select %p3759_p8, 1, 0 }
  0x1b   : > { %p3764_p10 = pnand %p2445_p7, %p226_p9  ;;  %s3649_s14 = smov [#allocation7]  }
  0x1c   : > { %4340 = sst [smem:[#allocation21_spill]] %s4339_s12  ;;  %s238_s15 = sshll.u32 %s3649_s14, 4  ;;  %s239_s15 = int_to_ptr.vmem [resolvable:$true] %s238_s15 }
  0x1d   : > { %s4341_s13 = scalar_select %p3764_p10, 1, 0 }
  0x1e   : > { %p3137_p11 = pneg %p3764_p10  ;;  %s3650_s17 = smov [#allocation10]  }
  0x1f   : > { %s254_s18 = sshll.u32 %s3650_s17, 4  ;;  %s3418_s19 = scalar_lea.vmem %s239_s15, 9216  ;;  %s255_s18 = int_to_ptr.vmem [resolvable:$true] %s254_s18 }
  0x20   : > { %p3773_p13 = pnand %p3137_p11, %p4304_p1  ;;  %p3419_p2 = scmp.ne.s32.totalorder %s239_s15, %s3418_s19 }
  0x21   : > { %p3426_p9 = scmp.lt.s32.totalorder %s239_s15, %s239_s15  ;;  %p3427_p12 = scmp.lt.s32.totalorder %s3418_s19, %s3418_s19 }
  0x22   : > { %p3409_p0 = pneg %p3773_p13 }
  0x23   : > { %p3428_p3 = por %p3427_p12, %p3426_p9 }
  0x24   : > { %p3421_p5 = pnand %p3419_p2, %p3409_p0 }
  0x26   : > { %p3422_p7 = pneg %p3421_p5 }
  0x28   : > { %p3429_p11 = pnand %p3428_p3, %p3422_p7 }
  0x2a   : > { %3432 = shalt.err (!%p3429_p11)
}
  0x2b   : > { %s3651_s20 = smov 64   ;;  %s3652_s21 = smov 4  }
  0x2c   : > { %s4343_s2 = sld [smem:[#allocation44_spill]]  ;;  %s3444_s27 = scalar_lea.vmem %s255_s18, 2048 }
  0x2d   : > { %p3445_p1 = scmp.ne.s32.totalorder %s255_s18, %s3444_s27  ;;  %p3452_p8 = scmp.lt.s32.totalorder %s255_s18, %s255_s18 }
  0x2e   : > { %p3453_p6 = scmp.lt.s32.totalorder %s3444_s27, %s3444_s27 }
  0x2f   : > { %p3447_p2 = pnand %p3445_p1, %p3409_p0 }
  0x30   : > { %p3454_p12 = por %p3453_p6, %p3452_p8 }
  0x31   : > { %p3448_p5 = pneg %p3447_p2 }
  0x32   : > { %3140 = dma.hbm_to_vmem [thread:$0]  (!%p3773_p13), %s4343_s2, 9216, %s239_s15, [#allocation6], %s3651_s20, %s3651_s20, %s3652_s21  }
  0x33   : > { %p3455_p3 = pnand %p3454_p12, %p3448_p5 }
  0x35   : > { %3458 = shalt.err (!%p3455_p3)
}
  0x36   : > { %s4306_s9 = smov 128   ;;  %s4308_s14 = smov 8  }
  0x37   : > { %s4344_s5 = sld [smem:[#allocation45_spill]]  ;;  %s3799_s19 = sadd.s32 1, %s3647_s30  }
  0x38   : > { %4345 = sst [smem:[#allocation22_spill]] %s3799_s19  ;;  %s3803_s20 = ssub.s32 %s3647_s30, %s3799_s19 }
  0x39   : > { %s35_s21 = sor.u32 %s3803_s20, %s3803_s20  ;;  %s38_s22 = sadd.s32 1, %s3643_s29 }
  0x3a   : > { %p36_p1 = scmp.eq.s32.totalorder %s35_s21, 0  ;;  %p45_p6 = scmp.ne.s32.totalorder %s3643_s29, %s3639_s28 }
  0x3b   : > { %p4311_p8 = scmp.eq.s32.totalorder %s3647_s30, 0  ;;  %p4310_p0 = scmp.lt.s32.totalorder %s3647_s30, 2 }
  0x3c   : > { %s3813_s16 = scalar_select %p36_p1, %s3643_s29, %s38_s22  }
  0x3d   : > { %3143 = dma.hbm_to_vmem [thread:$0]  (!%p3773_p13), %s4344_s5, 2048, %s255_s18, [#allocation9], %s4306_s9, %s4306_s9, %s4308_s14  }
  0x3e   : > { %4346 = sst [smem:[#allocation23_spill]] %s3813_s16  ;;  %p47_p7 = por %p4311_p8, %p45_p6 }
  0x3f   : > { %s3818_s23 = sand.u32 1, %s3643_s29   ;;  %s2617_s27 = sshll.u32 %s3647_s30, 5 }
  0x40   : > { %s2449_s18 = sshll.u32 %s3818_s23, 7  ;;  %s281_s15 = sadd.s32 %s3647_s30, %s2617_s27 }
  0x41   : > { %s275_s17 = scalar_lea.vmem [#allocation2], %s2449_s18  ;;  %s2452_s14 = sshll.u32 %s281_s15, 7 }
  0x42   : > { %s284_s9 = sshll.u32 %s275_s17, 4  ;;  %s4347_s0 = sld [smem:[#allocation42_spill]]  ;;  %s3823_s9 = int_to_ptr.vmem [resolvable:$true] %s284_s9 }
  0x43   : > { %p3832_p13 = pnand %p4310_p0, %p47_p7 }
  0x45   : > { %s4348_s22 = scalar_select %p3832_p13, 1, 0 }
  0x46   : > { %p4319_p11 = pneg %p3832_p13 }
  0x48   : > { %s3828_s5 = scalar_lea.hbm %s4347_s0, %s2452_s14  ;;  %s3464_s15 = scalar_lea.hbm %s4347_s0, 8192 }
  0x49   : > { %s3459_s27 = scalar_lea.hbm %s3828_s5, 2048  ;;  %p3465_p12 = scmp.lt.s32.totalorder %s3828_s5, %s4347_s0 }
  0x4a   : > { %p3460_p9 = scmp.ne.s32.totalorder %s3828_s5, %s3459_s27  ;;  %p3466_p3 = scmp.lt.s32.totalorder %s3464_s15, %s3459_s27 }
  0x4c   : > { %p3462_p2 = pnand %p4319_p11, %p3460_p9  ;;  %p3467_p1 = por %p3466_p3, %p3465_p12 }
  0x4e   : > { %p3463_p5 = pneg %p3462_p2 }
  0x50   : > { %p3468_p6 = pnand %p3467_p1, %p3463_p5 }
  0x52   : > { %3471 = shalt.err (!%p3468_p6)
}
  0x53   : > { %s3472_s18 = scalar_lea.vmem %s3823_s9, 2048  ;;  %s3655_s2 = smov [#allocation2]  }
  0x54   : > { %p3473_p7 = scmp.ne.s32.totalorder %s3823_s9, %s3472_s18  ;;  %s3477_s14 = sshll.u32 %s3655_s2, 4  ;;  %s3478_s14 = int_to_ptr.vmem [resolvable:$false] %s3477_s14 }
  0x55   : > { %s3479_s16 = scalar_lea.vmem %s3478_s14, 4096  ;;  %p3480_p0 = scmp.lt.s32.totalorder %s3823_s9, %s3478_s14 }
  0x56   : > { %p3475_p9 = pnand %p3473_p7, %p4319_p11  ;;  %p3481_p8 = scmp.lt.s32.totalorder %s3479_s16, %s3472_s18 }
  0x58   : > { %p3476_p2 = pneg %p3475_p9  ;;  %p3482_p4 = por %p3481_p8, %p3480_p0 }
  0x5a   : > { %p3483_p12 = pnand %p3482_p4, %p3476_p2 }
  0x5c   : > { %3486 = shalt.err (!%p3483_p12)
}
  0x5d   : > { %s4316_s27 = smov 256   ;;  %s4349_s15 = smov 8  }
  0x5e   : > { %s4350_s17 = smov 128   ;;  %s4351_s21 = scalar_lea.sflag [#allocation3], %s3818_s23 }
  0x5f   : > { %3147 = dma.hbm_to_vmem [thread:$0]  (!%p3832_p13), %s3828_s5, 2048, %s3823_s9, %s4351_s21, %s4316_s27, %s4350_s17, %s4349_s15  }
  0x60   : > { %p62_p4 = scmp.eq.s32.totalorder %s3803_s20, 0  ;;  %s64_s16 = sadd.s32 1, %s3631_s26 }
  0x61   : > { %p71_p8 = scmp.ne.s32.totalorder %s3631_s26, %s3627_s25  ;;  %s4320_s18 = sand.u32 1, %s3647_s30  }
  0x62   : > { %s3872_s2 = scalar_select %p62_p4, %s3631_s26, %s64_s16  }
  0x63   : > { %p4353_p0 = scmp.eq.s32.totalorder %s3647_s30, 0  ;;  %p4354_p3 = scmp.eq.s32.totalorder %s3738_s8, 1 }
  0x64   : > { %4352 = sst [smem:[#allocation24_spill]] %s3872_s2  ;;  %s296_s0 = sand.u32 1, %s3631_s26  }
  0x65   : > { %p73_p5 = por %p71_p8, %p4353_p0  ;;  %p3878_p1 = por %p4354_p3, %p71_p8 }
  0x66   : > { %s3118_s29 = smul.u32 576, %s296_s0  ;;  %p4357_p6 = scmp.lt.s32.totalorder %s3647_s30, 2 }
  0x67   : > { %s4355_s14 = scalar_select %p3878_p1, 1, 0 }
  0x68   : > { %p3885_p7 = pnand %p4357_p6, %p73_p5  ;;  %s3119_s5 = smul.u32 9216, %s3647_s30 }
  0x69   : > { %4356 = sst [smem:[#allocation25_spill]] %s4355_s14  ;;  %s298_s16 = scalar_lea.vmem [#allocation5], %s3118_s29 }
  0x6a   : > { %s4359_s1 = sld [smem:[#allocation43_spill]]  ;;  %s306_s27 = sshll.u32 %s298_s16, 4  ;;  %s3895_s27 = int_to_ptr.vmem [resolvable:$true] %s306_s27 }
  0x6b   : > { %s3899_s0 = scalar_lea.sflag [#allocation6], %s4320_s18  ;;  %p3489_p2 = pneg %p3885_p7 }
  0x70   : > { %s3893_s21 = scalar_lea.hbm %s4359_s1, %s3119_s5  ;;  %s3492_s5 = scalar_lea.hbm %s4359_s1, 18432 }
  0x71   : > { %s3487_s2 = scalar_lea.hbm %s3893_s21, 9216  ;;  %p3493_p8 = scmp.lt.s32.totalorder %s3893_s21, %s4359_s1 }
  0x72   : > { %p3488_p9 = scmp.ne.s32.totalorder %s3893_s21, %s3487_s2  ;;  %p3494_p0 = scmp.lt.s32.totalorder %s3492_s5, %s3487_s2 }
  0x74   : > { %p3490_p12 = pnand %p3489_p2, %p3488_p9  ;;  %p3495_p5 = por %p3494_p0, %p3493_p8 }
  0x76   : > { %p3491_p4 = pneg %p3490_p12 }
  0x78   : > { %p3496_p3 = pnand %p3495_p5, %p3491_p4 }
  0x7a   : > { %3499 = shalt.err (!%p3496_p3)
}
  0x7b   : > { %s3500_s29 = scalar_lea.vmem %s3895_s27, 9216  ;;  %s3657_s16 = smov [#allocation5]  }
  0x7c   : > { %p3501_p6 = scmp.ne.s32.totalorder %s3895_s27, %s3500_s29  ;;  %s3505_s18 = sshll.u32 %s3657_s16, 4  ;;  %s3506_s18 = int_to_ptr.vmem [resolvable:$false] %s3505_s18 }
  0x7d   : > { %s3507_s26 = scalar_lea.vmem %s3506_s18, 18432  ;;  %p3508_p12 = scmp.lt.s32.totalorder %s3895_s27, %s3506_s18 }
  0x7e   : > { %p3503_p11 = pnand %p3501_p6, %p3489_p2  ;;  %p3509_p1 = scmp.lt.s32.totalorder %s3507_s26, %s3500_s29 }
  0x80   : > { %p3504_p9 = pneg %p3503_p11  ;;  %p3510_p10 = por %p3509_p1, %p3508_p12 }
  0x82   : > { %p3511_p13 = pnand %p3510_p10, %p3504_p9 }
  0x84   : > { %3514 = shalt.err (!%p3511_p13)
}
  0x85   : > { %s3658_s12 = smov 576   ;;  %s3659_s2 = smov 36  }
  0x86   : > { %3150 = dma.hbm_to_vmem [thread:$0]  (!%p3885_p7), %s3893_s21, 9216, %s3895_s27, %s3899_s0, %s3658_s12, %s3658_s12, %s3659_s2  }
  0x87   : > { %s2456_s9 = sshll.u32 %s3818_s23, 4  ;;  %s2618_s5 = sshll.u32 %s3647_s30, 2 }
  0x88   : > { %s326_s18 = sadd.s32 %s3647_s30, %s2618_s5  ;;  %s320_s20 = scalar_lea.vmem [#allocation8], %s2456_s9 }
  0x89   : > { %s329_s29 = sshll.u32 %s320_s20, 4  ;;  %s2459_s16 = sshll.u32 %s326_s18, 7  ;;  %s3923_s29 = int_to_ptr.vmem [resolvable:$true] %s329_s29 }
  0x8a   : > { %s3928_s24 = scalar_lea.hbm %s4300_s4, %s2459_s16  ;;  %s4360_s7 = sand.u32 1, %s3647_s30  }
  0x8b   : > { %s317_s14 = scalar_lea.sflag [#allocation9], %s4360_s7  ;;  %s3515_s19 = scalar_lea.hbm %s3928_s24, 256 }
  0x8c   : > { %p3516_p10 = scmp.ne.s32.totalorder %s3928_s24, %s3515_s19  ;;  %p4361_p13 = scmp.ne.s32.totalorder %s4348_s22, 0 }
  0x8d   : > { %s3520_s21 = scalar_lea.hbm %s4300_s4, 1024  ;;  %p3521_p2 = scmp.lt.s32.totalorder %s3928_s24, %s4300_s4 }
  0x8e   : > { %p4362_p11 = pneg %p4361_p13  ;;  %p3522_p4 = scmp.lt.s32.totalorder %s3520_s21, %s3515_s19 }
  0x90   : > { %p3518_p1 = pnand %p3516_p10, %p4362_p11  ;;  %p3523_p8 = por %p3522_p4, %p3521_p2 }
  0x92   : > { %p3519_p7 = pneg %p3518_p1 }
  0x94   : > { %p3524_p0 = pnand %p3523_p8, %p3519_p7 }
  0x96   : > { %3527 = shalt.err (!%p3524_p0)
}
  0x97   : > { %s3528_s1 = scalar_lea.vmem %s3923_s29, 256  ;;  %p4363_p3 = pmov %p4362_p11 }
  0x98   : > { %p3529_p5 = scmp.ne.s32.totalorder %s3923_s29, %s3528_s1  ;;  %s3660_s7 = smov [#allocation8]  }
  0x99   : > { %s3533_s2 = sshll.u32 %s3660_s7, 4  ;;  %s3534_s2 = int_to_ptr.vmem [resolvable:$false] %s3533_s2 }
  0x9a   : > { %p3531_p6 = pnand %p3529_p5, %p4363_p3  ;;  %s3535_s9 = scalar_lea.vmem %s3534_s2, 512 }
  0x9b   : > { %p3536_p12 = scmp.lt.s32.totalorder %s3923_s29, %s3534_s2  ;;  %p3537_p10 = scmp.lt.s32.totalorder %s3535_s9, %s3528_s1 }
  0x9c   : > { %p3532_p9 = pneg %p3531_p6 }
  0x9d   : > { %p3538_p11 = por %p3537_p10, %p3536_p12 }
  0x9f   : > { %p3539_p1 = pnand %p3538_p11, %p3532_p9 }
  0xa1   : > { %3542 = shalt.err (!%p3539_p1)
}
  0xa2   : > { %s4364_s5 = smov 256   ;;  %p4365_p7 = scmp.ne.s32.totalorder %s4341_s13, 0 }
  0xa3   : > { %3153 = dma.hbm_to_vmem [thread:$0]  (!%p4361_p13), %s3928_s24, 256, %s3923_s29, %s317_s14, %s4364_s5, %s4350_s17, %s4349_s15  }
  0xa4   : > { %341 = sbr.rel (%p4365_p7) target bundleno = 1268 (0x4f4), region = 48 }
  0xa9   : > { %s343_s18 = sand.u32 1, %s3639_s28   ;;  %p4366_p2 = scmp.ne.s32.totalorder %s4337_s10, 0 }
  0xaa   : > { %s2461_s20 = sshll.u32 %s343_s18, 7  ;;  %s344_s16 = scalar_lea.sflag [#allocation3], %s343_s18 }
  0xab   : > { %s3960_s26 = scalar_lea.vmem [#allocation2], %s2461_s20 }
  0xac   : > { %3598 = dma.done.wait (%p4366_p2), %s344_s16, 2048  }
  0xad   : > { %3600 = vsyncadd (%p4366_p2), %s344_s16, 4294965248  ;;  %s352_s22 = sand.u32 1, %s3738_s8   ;;  %s3968_s24 = sand.u32 1, %s3627_s25  }
  0xae   : > { %s3120_s13 = smul.u32 576, %s3968_s24  ;;  %s353_s15 = scalar_lea.sflag [#allocation6], %s352_s22 }
  0xaf   : > { %p4367_p13 = scmp.ne.s32.totalorder %s4338_s11, 0 }
  0xb0   : > { %s3971_s17 = scalar_lea.vmem [#allocation5], %s3120_s13 }
  0xb1   : > { %3602 = dma.done.wait (%p4367_p13), %s353_s15, 9216  }
  0xb2   : > { %3604 = vsyncadd (%p4367_p13), %s353_s15, 4294958080  ;;  %p4368_p4 = scmp.eq.s32.totalorder %s3738_s8, 0 }
  0xb4   : > { %3606 = dma.done.wait (%p4368_p4), [#allocation6], 9216   ;;  %p4369_p8 = pmov %p4368_p4 }
  0xb5   : > { %s2463_s14 = sshll.u32 %s343_s18, 4  ;;  %s366_s29 = scalar_lea.sflag [#allocation9], %s352_s22 }
  0xb6   : > { %3608 = vsyncadd (%p4369_p8), [#allocation6], 4294958080  ;;  %s3981_s19 = scalar_lea.vmem [#allocation8], %s2463_s14 }
  0xb7   : > { %3610 = dma.done.wait (%p4366_p2), %s366_s29, 256  }
  0xb8   : > { %3612 = vsyncadd (%p4366_p2), %s366_s29, 4294967040  ;;  %p4370_p0 = pmov %p4368_p4 }
  0xba   : > { %3614 = dma.done.wait (%p4370_p0), [#allocation9], 2048   ;;  %p4371_p5 = pmov %p4370_p0 }
  0xbb   : > { %v3231_v0 = vld [vmem:[#allocation7 + $0x78] sm:$0xff]   ;;  %v3235_v4 = vld [vmem:[#allocation7 + $0x70] sm:$0xff]   ;;  %v3239_v8 = vld [vmem:[#allocation7 + $0x68] sm:$0xff]   ;;  %s2465_s23 = sshll.u32 %s3968_s24, 4  ;;  %s4404_s0 = sld [smem:[#allocation25_spill]] }
  0xbc   : > { %3616 = vsyncadd (%p4371_p5), [#allocation9], 4294965248  ;;  %v3232_v1 = vld [vmem:[#allocation7 + $0xf8] sm:$0xff]   ;;  %2620 = vmatprep.subr.bf16.mxu0 %v3231_v0  ;;  %v3236_v5 = vld [vmem:[#allocation7 + $0xf0] sm:$0xff]   ;;  %s413_s12 = scalar_lea.vmem [#allocation11], %s2465_s23  ;;  %s2619_s7 = sshll.u32 %s3738_s8, 8 }
  0xbd   : > { %v3233_v2 = vld [vmem:[#allocation7 + $0x38] sm:$0xff]   ;;  %2684 = vmatprep.subr.bf16.mxu1 %v3232_v1  ;;  %v3237_v6 = vld [vmem:[#allocation7 + $0x30] sm:$0xff]   ;;  %v3240_v9 = vld [vmem:[#allocation7 + $0xe8] sm:$0xff]   ;;  %s2303_s1 = sshll.u32 %s413_s12, 4  ;;  %s4405_s5 = sld [smem:[#allocation46_spill]]  ;;  %s4239_s1 = int_to_ptr.vmem [resolvable:$true] %s2303_s1 }
  0xbe   : > { %v3234_v3 = vld [vmem:[#allocation7 + $0xb8] sm:$0xff]   ;;  %2621 = vmatpush3.bf16.msra.mxu0 %v3233_v2  ;;  %v3238_v7 = vld [vmem:[#allocation7 + $0xb0] sm:$0xff]   ;;  %v3241_v10 = vld [vmem:[#allocation7 + $0x28] sm:$0xff]   ;;  %s2290_s20 = scalar_lea.sflag [#allocation4], %s3968_s24  ;;  %s3543_s16 = scalar_lea.vmem %s4239_s1, 256 }
  0xbf   : > { %2685 = vmatpush3.bf16.msra.mxu1 %v3234_v3  ;;  %2622 = vmatprep.subr.bf16.mxu0 %v3235_v4  ;;  %v3242_v11 = vld [vmem:[#allocation7 + $0xa8] sm:$0xff]   ;;  %v3243_v12 = vld [vmem:[#allocation7 + $0x60] sm:$0xff]   ;;  %v3247_v16 = vld [vmem:[#allocation7 + $0x58] sm:$0xff]   ;;  %p3544_p3 = scmp.ne.s32.totalorder %s4239_s1, %s3543_s16  ;;  %s3661_s8 = smov [#allocation11]  }
  0xc0   : > { %2686 = vmatprep.subr.bf16.mxu1 %v3236_v5  ;;  %v3244_v13 = vld [vmem:[#allocation7 + $0xe0] sm:$0xff]   ;;  %v3248_v17 = vld [vmem:[#allocation7 + $0xd8] sm:$0xff]   ;;  %v3251_v20 = vld [vmem:[#allocation7 + $0x50] sm:$0xff]  }
  0xc1   : > { %v3245_v14 = vld [vmem:[#allocation7 + $0x20] sm:$0xff]   ;;  %v3249_v18 = vld [vmem:[#allocation7 + $0x18] sm:$0xff]   ;;  %v3252_v21 = vld [vmem:[#allocation7 + $0xd0] sm:$0xff]   ;;  %p4406_p6 = scmp.ne.s32.totalorder %s4404_s0, 0 }
  0xc2   : > { %2623 = vmatpush3.bf16.msra.mxu0 %v3237_v6  ;;  %v3246_v15 = vld [vmem:[#allocation7 + $0xa0] sm:$0xff]   ;;  %v3250_v19 = vld [vmem:[#allocation7 + $0x98] sm:$0xff]   ;;  %v3253_v22 = vld [vmem:[#allocation7 + $0x10] sm:$0xff]  }
  0xc3   : > { %2687 = vmatpush3.bf16.msra.mxu1 %v3238_v7  ;;  %2624 = vmatprep.subr.bf16.mxu0 %v3239_v8  ;;  %v3254_v23 = vld [vmem:[#allocation7 + $0x90] sm:$0xff]   ;;  %v3255_v24 = vld [vmem:[#allocation7 + $0x48] sm:$0xff]   ;;  %v3259_v28 = vld [vmem:[#allocation7 + $0x40] sm:$0xff]   ;;  %s4244_s18 = scalar_lea.hbm %s4405_s5, %s2619_s7  ;;  %p3545_p9 = pnand %p3544_p3, %p4406_p6 }
  0xc4   : > { %2688 = vmatprep.subr.bf16.mxu1 %v3240_v9  ;;  %v3256_v25 = vld [vmem:[#allocation7 + $0xc8] sm:$0xff]   ;;  %v3260_v29 = vld [vmem:[#allocation7 + $0xc0] sm:$0xff]   ;;  %v3271_v37 = vld [vmem:[%s3971_s17 + $0x54] ss:$36 sps:$4 sm:$0xff]  }
  0xc5   : > { %v3257_v26 = vld [vmem:[#allocation7 + $0x8] sm:$0xff]   ;;  %v3261_v30 = vld [vmem:[#allocation7] sm:$0xff]   ;;  %v3274_v39 = vld [vmem:[%s3971_s17 + $0x50] ss:$36 sps:$4 sm:$0xff]   ;;  %p3546_p12 = pneg %p3545_p9 }
  0xc6   : > { %2625 = vmatpush3.bf16.msra.mxu0 %v3241_v10  ;;  %v3258_v27 = vld [vmem:[#allocation7 + $0x88] sm:$0xff]   ;;  %v3262_v31 = vld [vmem:[#allocation7 + $0x80] sm:$0xff]   ;;  %v3275_v40 = vld [vmem:[%s3971_s17 + $0x94] ss:$36 sps:$4 sm:$0xff]  }
  0xc7   : > { %2689 = vmatpush3.bf16.msra.mxu1 %v3242_v11  ;;  %2626 = vmatprep.subr.bf16.mxu0 %v3243_v12  ;;  %v3263_v32 = vld [vmem:[%s3971_s17] ss:$36 sps:$4 sm:$0xff]   ;;  %v3266_v34 = vld [vmem:[%s3971_s17 + $0x8] ss:$36 sps:$4 sm:$0xff]   ;;  %v3279_v42 = vld [vmem:[%s3971_s17 + $0x90] ss:$36 sps:$4 sm:$0xff]  }
  0xc8   : > { %2690 = vmatprep.subr.bf16.mxu1 %v3244_v13  ;;  %v3265_v33 = vld [vmem:[%s3971_s17 + $0x4] ss:$36 sps:$4 sm:$0xff]   ;;  %v3268_v35 = vld [vmem:[%s3971_s17 + $0xc] ss:$36 sps:$4 sm:$0xff]   ;;  %v3277_v41 = vld [vmem:[%s3971_s17 + $0x9c] ss:$36 sps:$4 sm:$0xff]  }
  0xc9   : > { %1475 = vmatprep.mubr.bf16.mxu0 %v3265_v33  ;;  %v3269_v36 = vld [vmem:[%s3971_s17 + $0x4c] ss:$36 sps:$4 sm:$0xff]   ;;  %1572 = vmatprep.mubr.bf16.mxu1 %v3268_v35  ;;  %v3293_v43 = vld [vmem:[#allocation7 + $0x178] sm:$0xff]   ;;  %v3283_v47 = vld [vmem:[%s3971_s17 + $0xe4] ss:$36 sps:$4 sm:$0xff]  }
  0xca   : > { %2627 = vmatpush3.bf16.msra.mxu0 %v3245_v14  ;;  %v3273_v38 = vld [vmem:[%s3971_s17 + $0x48] ss:$36 sps:$4 sm:$0xff]   ;;  %v3280_v44 = vld [vmem:[%s3971_s17 + $0x98] ss:$36 sps:$4 sm:$0xff]   ;;  %v3297_v50 = vld [vmem:[#allocation7 + $0x170] sm:$0xff]  }
  0xcb   : > { %2691 = vmatpush3.bf16.msra.mxu1 %v3246_v15  ;;  %2628 = vmatprep.subr.bf16.mxu0 %v3247_v16  ;;  %v3281_v45 = vld [vmem:[%s3971_s17 + $0xdc] ss:$36 sps:$4 sm:$0xff]   ;;  %v3298_v51 = vld [vmem:[#allocation7 + $0x130] sm:$0xff]   ;;  %v3287_v55 = vld [vmem:[%s3971_s17 + $0x124] ss:$36 sps:$4 sm:$0xff]  }
  0xcc   : > { %2692 = vmatprep.subr.bf16.mxu1 %v3248_v17  ;;  %v3294_v46 = vld [vmem:[#allocation7 + $0x138] sm:$0xff]   ;;  %v3299_v52 = vld [vmem:[#allocation7 + $0x1f0] sm:$0xff]   ;;  %v3286_v54 = vld [vmem:[%s3971_s17 + $0xe0] ss:$36 sps:$4 sm:$0xff]  }
  0xcd   : > { %v3295_v48 = vld [vmem:[#allocation7 + $0x1f8] sm:$0xff]   ;;  %v3304_v56 = vld [vmem:[#allocation7 + $0x1b0] sm:$0xff]   ;;  %v3307_v58 = vld [vmem:[#allocation7 + $0x168] sm:$0xff]  }
  0xce   : > { %2629 = vmatpush3.bf16.msra.mxu0 %v3249_v18  ;;  %v3296_v49 = vld [vmem:[#allocation7 + $0x1b8] sm:$0xff]   ;;  %v3289_v57 = vld [vmem:[%s3971_s17 + $0x12c] ss:$36 sps:$4 sm:$0xff]   ;;  %v3311_v62 = vld [vmem:[#allocation7 + $0x160] sm:$0xff]  }
  0xcf   : > { %2693 = vmatpush3.bf16.msra.mxu1 %v3250_v19  ;;  %2630 = vmatprep.subr.bf16.mxu0 %v3251_v20  ;;  %v3285_v53 = vld [vmem:[%s3971_s17 + $0xd8] ss:$36 sps:$4 sm:$0xff]   ;;  %v3308_v59 = vld [vmem:[#allocation7 + $0x128] sm:$0xff]   ;;  %v3312_v63 = vld [vmem:[#allocation7 + $0x120] sm:$0xff]  }
  0xd0   : > { %2694 = vmatprep.subr.bf16.mxu1 %v3252_v21  ;;  %v3309_v60 = vld [vmem:[#allocation7 + $0x1e8] sm:$0xff]   ;;  %v3291_v0 = vld [vmem:[%s3971_s17 + $0x120] ss:$36 sps:$4 sm:$0xff]   ;;  %v3302_v5 = vld [vmem:[%s3971_s17 + $0x174] ss:$36 sps:$4 sm:$0xff]  }
  0xd1   : > { %v3310_v61 = vld [vmem:[#allocation7 + $0x1a8] sm:$0xff]   ;;  %v3313_v1 = vld [vmem:[#allocation7 + $0x1e0] sm:$0xff]   ;;  %v3321_v6 = vld [vmem:[#allocation7 + $0x158] sm:$0xff]  }
  0xd2   : > { %2631 = vmatpush3.bf16.msra.mxu0 %v3253_v22  ;;  %v3292_v2 = vld [vmem:[%s3971_s17 + $0x128] ss:$36 sps:$4 sm:$0xff]   ;;  %v3318_v4 = vld [vmem:[#allocation7 + $0x1a0] sm:$0xff]   ;;  %v3322_v7 = vld [vmem:[#allocation7 + $0x118] sm:$0xff]  }
  0xd3   : > { %2695 = vmatpush3.bf16.msra.mxu1 %v3254_v23  ;;  %2632 = vmatprep.subr.bf16.mxu0 %v3255_v24  ;;  %v3300_v3 = vld [vmem:[%s3971_s17 + $0x16c] ss:$36 sps:$4 sm:$0xff]   ;;  %v3323_v8 = vld [vmem:[#allocation7 + $0x1d8] sm:$0xff]   ;;  %v3330_v23 = vld [vmem:[%s3971_s17 + $0x204] ss:$36 sps:$4 sm:$0xff]  }
  0xd4   : > { %2696 = vmatprep.subr.bf16.mxu1 %v3256_v25  ;;  %v3305_v9 = vld [vmem:[%s3971_s17 + $0x168] ss:$36 sps:$4 sm:$0xff]   ;;  %v3324_v10 = vld [vmem:[#allocation7 + $0x198] sm:$0xff]   ;;  %v3306_v11 = vld [vmem:[%s3971_s17 + $0x170] ss:$36 sps:$4 sm:$0xff]  }
  0xd5   : > { %v3314_v12 = vld [vmem:[%s3971_s17 + $0x1b4] ss:$36 sps:$4 sm:$0xff]   ;;  %v3316_v16 = vld [vmem:[%s3971_s17 + $0x1bc] ss:$36 sps:$4 sm:$0xff]   ;;  %v3335_v19 = vld [vmem:[#allocation7 + $0x148] sm:$0xff]  }
  0xd6   : > { %2633 = vmatpush3.bf16.msra.mxu0 %v3257_v26  ;;  %v3325_v13 = vld [vmem:[#allocation7 + $0x150] sm:$0xff]   ;;  %v3320_v20 = vld [vmem:[%s3971_s17 + $0x1b8] ss:$36 sps:$4 sm:$0xff]   ;;  %v3336_v22 = vld [vmem:[#allocation7 + $0x108] sm:$0xff]  }
  0xd7   : > { %2697 = vmatpush3.bf16.msra.mxu1 %v3258_v27  ;;  %2634 = vmatprep.subr.bf16.mxu0 %v3259_v28  ;;  %v3326_v14 = vld [vmem:[#allocation7 + $0x110] sm:$0xff]   ;;  %v3328_v21 = vld [vmem:[%s3971_s17 + $0x1fc] ss:$36 sps:$4 sm:$0xff]   ;;  %v3337_v24 = vld [vmem:[#allocation7 + $0x1c8] sm:$0xff]  }
  0xd8   : > { %2698 = vmatprep.subr.bf16.mxu1 %v3260_v29  ;;  %v3327_v15 = vld [vmem:[#allocation7 + $0x1d0] sm:$0xff]   ;;  %v3338_v25 = vld [vmem:[#allocation7 + $0x188] sm:$0xff]   ;;  %v3339_v26 = vld [vmem:[#allocation7 + $0x140] sm:$0xff]  }
  0xd9   : > { %v3332_v17 = vld [vmem:[#allocation7 + $0x190] sm:$0xff]   ;;  %v3340_v27 = vld [vmem:[#allocation7 + $0x100] sm:$0xff]   ;;  %v3346_v35 = vld [vmem:[%s3971_s17 + $0x18] ss:$36 sps:$4 sm:$0xff]  }
  0xda   : > { %2635 = vmatpush3.bf16.msra.mxu0 %v3261_v30  ;;  %v3319_v18 = vld [vmem:[%s3971_s17 + $0x1b0] ss:$36 sps:$4 sm:$0xff]   ;;  %v3341_v28 = vld [vmem:[#allocation7 + $0x1c0] sm:$0xff]   ;;  %v3333_v30 = vld [vmem:[%s3971_s17 + $0x1f8] ss:$36 sps:$4 sm:$0xff]  }
  0xdb   : > { %2699 = vmatpush3.bf16.msra.mxu1 %v3262_v31  ;;  %2748 = vmatprep.subr.bf16.mxu0 %v3293_v43  ;;  %v3345_v29 = vld [vmem:[#allocation7 + $0x180] sm:$0xff]  }
  0xdc   : > { %2812 = vmatprep.subr.bf16.mxu1 %v3295_v48  ;;  %v3334_v31 = vld [vmem:[%s3971_s17 + $0x200] ss:$36 sps:$4 sm:$0xff]   ;;  %v3360_v48 = vld [vmem:[%s3971_s17 + $0xa8] ss:$36 sps:$4 sm:$0xff]  }
  0xdd   : > { %1476 = vmatmul.mubr.bf16.vlgmr.msra.gmra.mxu0 %v3263_v32  ;;  %v3344_v32 = vld [vmem:[%s3971_s17 + $0x14] ss:$36 sps:$4 sm:$0xff]   ;;  %v3348_v33 = vld [vmem:[%s3971_s17 + $0x1c] ss:$36 sps:$4 sm:$0xff]   ;;  %v3355_v43 = vld [vmem:[%s3971_s17 + $0xa4] ss:$36 sps:$4 sm:$0xff]  }
  0xde   : > { %1573 = vmatmul.mubr.bf16.vlgmr.msra.gmra.mxu1 %v3266_v34  ;;  %1483 = vmatprep.mubr.bf16.mxu0 %v3269_v36  ;;  %v3342_v34 = vld [vmem:[%s3971_s17 + $0x10] ss:$36 sps:$4 sm:$0xff]   ;;  %v3349_v36 = vld [vmem:[%s3971_s17 + $0x5c] ss:$36 sps:$4 sm:$0xff]  }
  0xdf   : > { %1580 = vmatprep.mubr.bf16.mxu1 %v3271_v37  ;;  %2749 = vmatpush3.bf16.msra.mxu0 %v3294_v46  ;;  %v3352_v37 = vld [vmem:[%s3971_s17 + $0x64] ss:$36 sps:$4 sm:$0xff]   ;;  %v3386_v46 = vld [vmem:[#allocation7 + $0x218] sm:$0xff]  }
  0xe0   : > { %2813 = vmatpush3.bf16.msra.mxu1 %v3296_v49  ;;  %2750 = vmatprep.subr.bf16.mxu0 %v3297_v50  ;;  %v3361_v49 = vld [vmem:[%s3971_s17 + $0xec] ss:$36 sps:$4 sm:$0xff]   ;;  %v3364_v50 = vld [vmem:[%s3971_s17 + $0xf4] ss:$36 sps:$4 sm:$0xff]  }
  0xe1   : > { %2814 = vmatprep.subr.bf16.mxu1 %v3299_v52  ;;  %v3363_v52 = vld [vmem:[%s3971_s17 + $0xe8] ss:$36 sps:$4 sm:$0xff]  }
  0xe3   : > { %2751 = vmatpush3.bf16.msra.mxu0 %v3298_v51  ;;  %v3390_v51 = vld [vmem:[#allocation7 + $0x210] sm:$0xff]  }
  0xe4   : > { %2815 = vmatpush3.bf16.msra.mxu1 %v3304_v56  ;;  %2752 = vmatprep.subr.bf16.mxu0 %v3307_v58  ;;  %v3371_v56 = vld [vmem:[%s3971_s17 + $0x13c] ss:$36 sps:$4 sm:$0xff]   ;;  %v3369_v58 = vld [vmem:[%s3971_s17 + $0x130] ss:$36 sps:$4 sm:$0xff]  }
  0xe5   : > { %1484 = vmatmul.mubr.bf16.gmra.mxu0 %v3273_v38  ;;  %2816 = vmatprep.subr.bf16.mxu1 %v3309_v60  ;;  %v3370_v38 = vld [vmem:[#allocation7 + $0x238] sm:$0xff]  }
  0xe6   : > { %1581 = vmatmul.mubr.bf16.gmra.mxu1 %v3274_v39  ;;  %1491 = vmatprep.mubr.bf16.mxu0 %v3275_v40  ;;  %v3374_v39 = vld [vmem:[#allocation7 + $0x230] sm:$0xff]   ;;  %v3351_v40 = vld [vmem:[%s3971_s17 + $0x58] ss:$36 sps:$4 sm:$0xff]  }
  0xe7   : > { %1588 = vmatprep.mubr.bf16.mxu1 %v3277_v41  ;;  %2753 = vmatpush3.bf16.msra.mxu0 %v3308_v59  ;;  %v3378_v41 = vld [vmem:[#allocation7 + $0x228] sm:$0xff]   ;;  %v3373_v59 = vld [vmem:[%s3971_s17 + $0x138] ss:$36 sps:$4 sm:$0xff]  }
  0xe8   : > { %2817 = vmatpush3.bf16.msra.mxu1 %v3310_v61  ;;  %2754 = vmatprep.subr.bf16.mxu0 %v3311_v62  ;;  %v3375_v60 = vld [vmem:[%s3971_s17 + $0x17c] ss:$36 sps:$4 sm:$0xff]   ;;  %v3379_v61 = vld [vmem:[%s3971_s17 + $0x184] ss:$36 sps:$4 sm:$0xff]  }
  0xe9   : > { %2818 = vmatprep.subr.bf16.mxu1 %v3313_v1  ;;  %v3377_v62 = vld [vmem:[%s3971_s17 + $0x178] ss:$36 sps:$4 sm:$0xff]   ;;  %v3387_v1 = vld [vmem:[%s3971_s17 + $0x1cc] ss:$36 sps:$4 sm:$0xff]  }
  0xeb   : > { %2755 = vmatpush3.bf16.msra.mxu0 %v3312_v63  ;;  %v3381_v63 = vld [vmem:[%s3971_s17 + $0x180] ss:$36 sps:$4 sm:$0xff]  }
  0xec   : > { %2819 = vmatpush3.bf16.msra.mxu1 %v3318_v4  ;;  %2756 = vmatprep.subr.bf16.mxu0 %v3321_v6  ;;  %v3391_v4 = vld [vmem:[%s3971_s17 + $0x20c] ss:$36 sps:$4 sm:$0xff]  }
  0xed   : > { %1492 = vmatmul.mubr.bf16.gmra.mxu0 %v3279_v42  ;;  %2820 = vmatprep.subr.bf16.mxu1 %v3323_v8  ;;  %v3354_v42 = vld [vmem:[%s3971_s17 + $0x60] ss:$36 sps:$4 sm:$0xff]   ;;  %v3393_v6 = vld [vmem:[%s3971_s17 + $0x208] ss:$36 sps:$4 sm:$0xff]  }
  0xee   : > { %1589 = vmatmul.mubr.bf16.gmra.mxu1 %v3280_v44  ;;  %1499 = vmatprep.mubr.bf16.mxu0 %v3281_v45  ;;  %v3358_v44 = vld [vmem:[%s3971_s17 + $0xac] ss:$36 sps:$4 sm:$0xff]   ;;  %v3382_v45 = vld [vmem:[#allocation7 + $0x220] sm:$0xff]  }
  0xef   : > { %1596 = vmatprep.mubr.bf16.mxu1 %v3283_v47  ;;  %2757 = vmatpush3.bf16.msra.mxu0 %v3322_v7  ;;  %v3357_v47 = vld [vmem:[%s3971_s17 + $0xa0] ss:$36 sps:$4 sm:$0xff]   ;;  %v3397_v7 = vld [vmem:[%s3971_s17 + $0x210] ss:$36 sps:$4 sm:$0xff]  }
  0xf0   : > { %2821 = vmatpush3.bf16.msra.mxu1 %v3324_v10  ;;  %2758 = vmatprep.subr.bf16.mxu0 %v3325_v13  ;;  %v3399_v8 = vld [vmem:[%s3971_s17 + $0x20] ss:$36 sps:$4 sm:$0xff]   ;;  %v3401_v10 = vld [vmem:[%s3971_s17 + $0xb0] ss:$36 sps:$4 sm:$0xff]   ;;  %v3404_v13 = vld [vmem:[%s3971_s17 + $0x188] ss:$36 sps:$4 sm:$0xff]  }
  0xf1   : > { %2822 = vmatprep.subr.bf16.mxu1 %v3327_v15  ;;  %v3406_v15 = vld [vmem:[%s3971_s17 + $0x218] ss:$36 sps:$4 sm:$0xff]  }
  0xf3   : > { %2759 = vmatpush3.bf16.msra.mxu0 %v3326_v14  ;;  %v3405_v14 = vld [vmem:[%s3971_s17 + $0x1d0] ss:$36 sps:$4 sm:$0xff]  }
  0xf4   : > { %2823 = vmatpush3.bf16.msra.mxu1 %v3332_v17  ;;  %2760 = vmatprep.subr.bf16.mxu0 %v3335_v19 }
  0xf5   : > { %1500 = vmatmul.mubr.bf16.gmra.mxu0 %v3285_v53  ;;  %2824 = vmatprep.subr.bf16.mxu1 %v3337_v24  ;;  %v3394_v53 = vld [vmem:[#allocation7 + $0x208] sm:$0xff]  }
  0xf6   : > { %1597 = vmatmul.mubr.bf16.gmra.mxu1 %v3286_v54  ;;  %1507 = vmatprep.mubr.bf16.mxu0 %v3287_v55  ;;  %v3366_v54 = vld [vmem:[%s3971_s17 + $0xf0] ss:$36 sps:$4 sm:$0xff]  }
  0xf7   : > { %1604 = vmatprep.mubr.bf16.mxu1 %v3289_v57  ;;  %2761 = vmatpush3.bf16.msra.mxu0 %v3336_v22  ;;  %v3367_v55 = vld [vmem:[%s3971_s17 + $0x134] ss:$36 sps:$4 sm:$0xff]   ;;  %v3398_v57 = vld [vmem:[#allocation7 + $0x200] sm:$0xff]  }
  0xf8   : > { %2825 = vmatpush3.bf16.msra.mxu1 %v3338_v25  ;;  %2762 = vmatprep.subr.bf16.mxu0 %v3339_v26 }
  0xf9   : > { %2826 = vmatprep.subr.bf16.mxu1 %v3341_v28 }
  0xfb   : > { %2763 = vmatpush3.bf16.msra.mxu0 %v3340_v27 }
  0xfc   : > { %2827 = vmatpush3.bf16.msra.mxu1 %v3345_v29  ;;  %2960 = vmatprep.subr.bf16.mxu0 %v3370_v38 }
  0xfd   : > { %1508 = vmatmul.mubr.bf16.gmra.mxu0 %v3291_v0  ;;  %v3383_v0 = vld [vmem:[%s3971_s17 + $0x1c4] ss:$36 sps:$4 sm:$0xff]  }
  0xfe   : > { %1605 = vmatmul.mubr.bf16.gmra.mxu1 %v3292_v2  ;;  %1515 = vmatprep.mubr.bf16.mxu0 %v3300_v3  ;;  %v3385_v2 = vld [vmem:[%s3971_s17 + $0x1c0] ss:$36 sps:$4 sm:$0xff]   ;;  %v3389_v3 = vld [vmem:[%s3971_s17 + $0x1c8] ss:$36 sps:$4 sm:$0xff]  }
  0xff   : > { %1612 = vmatprep.mubr.bf16.mxu1 %v3302_v5  ;;  %v3395_v5 = vld [vmem:[%s3971_s17 + $0x214] ss:$36 sps:$4 sm:$0xff]  }
 0x105   : > { %1516 = vmatmul.mubr.bf16.gmra.mxu0 %v3305_v9  ;;  %v3400_v9 = vld [vmem:[%s3971_s17 + $0x68] ss:$36 sps:$4 sm:$0xff]  }
 0x106   : > { %1613 = vmatmul.mubr.bf16.gmra.mxu1 %v3306_v11  ;;  %1523 = vmatprep.mubr.bf16.mxu0 %v3314_v12  ;;  %v3402_v11 = vld [vmem:[%s3971_s17 + $0xf8] ss:$36 sps:$4 sm:$0xff]   ;;  %v3403_v12 = vld [vmem:[%s3971_s17 + $0x140] ss:$36 sps:$4 sm:$0xff]  }
 0x107   : > { %1620 = vmatprep.mubr.bf16.mxu1 %v3316_v16 }
 0x10d   : > { %1524 = vmatmul.mubr.bf16.gmra.mxu0 %v3319_v18 }
 0x10e   : > { %1621 = vmatmul.mubr.bf16.gmra.mxu1 %v3320_v20  ;;  %1531 = vmatprep.mubr.bf16.mxu0 %v3328_v21 }
 0x10f   : > { %1628 = vmatprep.mubr.bf16.mxu1 %v3330_v23 }
 0x115   : > { %1532 = vmatmul.mubr.bf16.gmra.mxu0 %v3333_v30 }
 0x116   : > { %1629 = vmatmul.mubr.bf16.gmra.mxu1 %v3334_v31  ;;  %1669 = vmatprep.mubr.bf16.mxu0 %v3344_v32 }
 0x117   : > { %1766 = vmatprep.mubr.bf16.mxu1 %v3348_v33 }
 0x11d   : > { %1670 = vmatmul.mubr.bf16.vlgmr.msra.gmra.mxu0 %v3342_v34 }
 0x11e   : > { %1767 = vmatmul.mubr.bf16.vlgmr.msra.gmra.mxu1 %v3346_v35  ;;  %1677 = vmatprep.mubr.bf16.mxu0 %v3349_v36 }
 0x11f   : > { %1774 = vmatprep.mubr.bf16.mxu1 %v3352_v37  ;;  %2961 = vmatpush3.bf16.msra.mxu0 %v3370_v38 }
 0x120   : > { %2962 = vmatprep.subr.bf16.mxu0 %v3374_v39 }
 0x123   : > { %2963 = vmatpush3.bf16.msra.mxu0 %v3374_v39 }
 0x124   : > { %2964 = vmatprep.subr.bf16.mxu0 %v3378_v41 }
 0x125   : > { %1678 = vmatmul.mubr.bf16.gmra.mxu0 %v3351_v40 }
 0x126   : > { %1775 = vmatmul.mubr.bf16.gmra.mxu1 %v3354_v42  ;;  %1685 = vmatprep.mubr.bf16.mxu0 %v3355_v43 }
 0x127   : > { %1782 = vmatprep.mubr.bf16.mxu1 %v3358_v44  ;;  %2965 = vmatpush3.bf16.msra.mxu0 %v3378_v41 }
 0x128   : > { %2966 = vmatprep.subr.bf16.mxu0 %v3382_v45 }
 0x12b   : > { %2967 = vmatpush3.bf16.msra.mxu0 %v3382_v45 }
 0x12c   : > { %2968 = vmatprep.subr.bf16.mxu0 %v3386_v46 }
 0x12d   : > { %1686 = vmatmul.mubr.bf16.gmra.mxu0 %v3357_v47 }
 0x12e   : > { %1783 = vmatmul.mubr.bf16.gmra.mxu1 %v3360_v48  ;;  %1693 = vmatprep.mubr.bf16.mxu0 %v3361_v49 }
 0x12f   : > { %1790 = vmatprep.mubr.bf16.mxu1 %v3364_v50  ;;  %2969 = vmatpush3.bf16.msra.mxu0 %v3386_v46 }
 0x130   : > { %2970 = vmatprep.subr.bf16.mxu0 %v3390_v51 }
 0x133   : > { %2971 = vmatpush3.bf16.msra.mxu0 %v3390_v51 }
 0x134   : > { %2972 = vmatprep.subr.bf16.mxu0 %v3394_v53 }
 0x135   : > { %1694 = vmatmul.mubr.bf16.gmra.mxu0 %v3363_v52 }
 0x136   : > { %1791 = vmatmul.mubr.bf16.gmra.mxu1 %v3366_v54  ;;  %1701 = vmatprep.mubr.bf16.mxu0 %v3367_v55 }
 0x137   : > { %1798 = vmatprep.mubr.bf16.mxu1 %v3371_v56  ;;  %2973 = vmatpush3.bf16.msra.mxu0 %v3394_v53 }
 0x138   : > { %2974 = vmatprep.subr.bf16.mxu0 %v3398_v57 }
 0x13b   : > { %2975 = vmatpush3.bf16.msra.mxu0 %v3398_v57 }
 0x13d   : > { %1702 = vmatmul.mubr.bf16.gmra.mxu0 %v3369_v58 }
 0x13e   : > { %1799 = vmatmul.mubr.bf16.gmra.mxu1 %v3373_v59  ;;  %1709 = vmatprep.mubr.bf16.mxu0 %v3375_v60 }
 0x13f   : > { %1806 = vmatprep.mubr.bf16.mxu1 %v3379_v61 }
 0x145   : > { %1710 = vmatmul.mubr.bf16.gmra.mxu0 %v3377_v62 }
 0x146   : > { %1807 = vmatmul.mubr.bf16.gmra.mxu1 %v3381_v63  ;;  %1717 = vmatprep.mubr.bf16.mxu0 %v3383_v0 }
 0x147   : > { %1814 = vmatprep.mubr.bf16.mxu1 %v3387_v1 }
 0x14d   : > { %1718 = vmatmul.mubr.bf16.gmra.mxu0 %v3385_v2 }
 0x14e   : > { %1815 = vmatmul.mubr.bf16.gmra.mxu1 %v3389_v3  ;;  %1725 = vmatprep.mubr.bf16.mxu0 %v3391_v4 }
 0x14f   : > { %1822 = vmatprep.mubr.bf16.mxu1 %v3395_v5 }
 0x155   : > { %1726 = vmatmul.mubr.bf16.gmra.mxu0 %v3393_v6 }
 0x156   : > { %1823 = vmatmul.mubr.bf16.gmra.mxu1 %v3397_v7  ;;  %2976 = vmatprep.mubr.bf16.mxu0 %v3399_v8 }
 0x15d   : > { %2977 = vmatmul.mubr.bf16.vlgmr.msra.gmra.mxu0 %v3400_v9 }
 0x15e   : > { %2980 = vmatprep.mubr.bf16.mxu0 %v3401_v10 }
 0x165   : > { %2981 = vmatmul.mubr.bf16.gmra.mxu0 %v3402_v11 }
 0x166   : > { %2984 = vmatprep.mubr.bf16.mxu0 %v3403_v12 }
 0x16d   : > { %2985 = vmatmul.mubr.bf16.gmra.mxu0 %v3404_v13 }
 0x16e   : > { %2988 = vmatprep.mubr.bf16.mxu0 %v3405_v14 }
 0x175   : > { %2989 = vmatmul.mubr.bf16.gmra.mxu0 %v3406_v15 }
 0x19d   : > { %v2636_v16 = vpop.f32.mrf.mxu0 }
 0x19e   : > { %v2700_v17 = vpop.f32.mrf.mxu1 }
 0x19f   : > { %v2637_v18 = vpop.f32.mrf.mxu0 }
 0x1a0   : > { %v2638_v19 = vadd.f32 %v2637_v18, %v2636_v16  ;;  %v2701_v20 = vpop.f32.mrf.mxu1 }
 0x1a1   : > { %v2702_v21 = vadd.f32 %v2701_v20, %v2700_v17  ;;  %v2639_v22 = vpop.f32.mrf.mxu0 }
 0x1a2   : > { %v2703_v23 = vpop.f32.mrf.mxu1 }
 0x1a3   : > { %v4063_v24 = vadd.f32 %v2702_v21, %v2638_v19  ;;  %v2640_v25 = vpop.f32.mrf.mxu0 }
 0x1a4   : > { %v2641_v26 = vadd.f32 %v2640_v25, %v2639_v22  ;;  %v2704_v27 = vpop.f32.mrf.mxu1 }
 0x1a5   : > { %v2705_v28 = vadd.f32 %v2704_v27, %v2703_v23  ;;  %v2642_v29 = vpop.f32.mrf.mxu0 }
 0x1a6   : > { %v2706_v30 = vpop.f32.mrf.mxu1 }
 0x1a7   : > { %v4065_v31 = vadd.f32 %v2705_v28, %v2641_v26  ;;  %v2643_v32 = vpop.f32.mrf.mxu0 }
 0x1a8   : > { %v2644_v33 = vadd.f32 %v2643_v32, %v2642_v29  ;;  %v2707_v34 = vpop.f32.mrf.mxu1 }
 0x1a9   : > { %v2708_v35 = vadd.f32 %v2707_v34, %v2706_v30  ;;  %v2645_v36 = vpop.f32.mrf.mxu0 }
 0x1aa   : > { %v2709_v37 = vpop.f32.mrf.mxu1 }
 0x1ab   : > { %v4067_v38 = vadd.f32 %v2708_v35, %v2644_v33  ;;  %v2646_v39 = vpop.f32.mrf.mxu0 }
 0x1ac   : > { %v2647_v40 = vadd.f32 %v2646_v39, %v2645_v36  ;;  %v2710_v41 = vpop.f32.mrf.mxu1 }
 0x1ad   : > { %v2711_v42 = vadd.f32 %v2710_v41, %v2709_v37  ;;  %v2648_v43 = vpop.f32.mrf.mxu0 }
 0x1ae   : > { %v2712_v44 = vpop.f32.mrf.mxu1 }
 0x1af   : > { %v4069_v45 = vadd.f32 %v2711_v42, %v2647_v40  ;;  %v2649_v46 = vpop.f32.mrf.mxu0 }
 0x1b0   : > { %v2650_v47 = vadd.f32 %v2649_v46, %v2648_v43  ;;  %v2713_v48 = vpop.f32.mrf.mxu1 }
 0x1b1   : > { %v2714_v49 = vadd.f32 %v2713_v48, %v2712_v44  ;;  %v2651_v50 = vpop.f32.mrf.mxu0 }
 0x1b2   : > { %v2715_v51 = vpop.f32.mrf.mxu1 }
 0x1b3   : > { %v4071_v52 = vadd.f32 %v2714_v49, %v2650_v47  ;;  %v2652_v53 = vpop.f32.mrf.mxu0 }
 0x1b4   : > { %v2653_v54 = vadd.f32 %v2652_v53, %v2651_v50  ;;  %v2716_v55 = vpop.f32.mrf.mxu1 }
 0x1b5   : > { %v2717_v56 = vadd.f32 %v2716_v55, %v2715_v51  ;;  %v2654_v57 = vpop.f32.mrf.mxu0 }
 0x1b6   : > { %v2718_v58 = vpop.f32.mrf.mxu1 }
 0x1b7   : > { %v4073_v59 = vadd.f32 %v2717_v56, %v2653_v54  ;;  %v2655_v60 = vpop.f32.mrf.mxu0 }
 0x1b8   : > { %v2656_v61 = vadd.f32 %v2655_v60, %v2654_v57  ;;  %v2719_v62 = vpop.f32.mrf.mxu1 }
 0x1b9   : > { %v2720_v63 = vadd.f32 %v2719_v62, %v2718_v58  ;;  %v2657_v0 = vpop.f32.mrf.mxu0 }
 0x1ba   : > { %v2721_v1 = vpop.f32.mrf.mxu1 }
 0x1bb   : > { %v4075_v2 = vadd.f32 %v2720_v63, %v2656_v61  ;;  %v2658_v3 = vpop.f32.mrf.mxu0 }
 0x1bc   : > { %v2659_v4 = vadd.f32 %v2658_v3, %v2657_v0  ;;  %v2722_v5 = vpop.f32.mrf.mxu1  ;;  %v1928_v3 = vld [vmem:[%s3960_s26] sm:$0xff] }
 0x1bd   : > { %v2723_v6 = vadd.f32 %v2722_v5, %v2721_v1  ;;  %v2660_v7 = vpop.f32.mrf.mxu0  ;;  %3024 = vmatprep.mubr.f32.mxu1 %v1928_v3 }
 0x1be   : > { %v2724_v8 = vpop.f32.mrf.mxu1 }
 0x1bf   : > { %v4077_v9 = vadd.f32 %v2723_v6, %v2659_v4  ;;  %v2661_v10 = vpop.f32.mrf.mxu0 }
 0x1c0   : > { %v2662_v11 = vadd.f32 %v2661_v10, %v2660_v7  ;;  %v2725_v12 = vpop.f32.mrf.mxu1 }
 0x1c1   : > { %v2726_v13 = vadd.f32 %v2725_v12, %v2724_v8  ;;  %v2663_v14 = vpop.f32.mrf.mxu0 }
 0x1c2   : > { %v2727_v15 = vpop.f32.mrf.mxu1 }
 0x1c3   : > { %v4079_v16 = vadd.f32 %v2726_v13, %v2662_v11  ;;  %v2664_v17 = vpop.f32.mrf.mxu0 }
 0x1c4   : > { %v2665_v18 = vadd.f32 %v2664_v17, %v2663_v14  ;;  %v2728_v19 = vpop.f32.mrf.mxu1 }
 0x1c5   : > { %v2729_v20 = vadd.f32 %v2728_v19, %v2727_v15  ;;  %v2666_v21 = vpop.f32.mrf.mxu0 }
 0x1c6   : > { %v2730_v22 = vpop.f32.mrf.mxu1 }
 0x1c7   : > { %v4081_v23 = vadd.f32 %v2729_v20, %v2665_v18  ;;  %v2667_v25 = vpop.f32.mrf.mxu0 }
 0x1c8   : > { %v2668_v26 = vadd.f32 %v2667_v25, %v2666_v21  ;;  %v2731_v27 = vpop.f32.mrf.mxu1 }
 0x1c9   : > { %v2732_v28 = vadd.f32 %v2731_v27, %v2730_v22  ;;  %v2669_v29 = vpop.f32.mrf.mxu0 }
 0x1ca   : > { %v2733_v30 = vpop.f32.mrf.mxu1 }
 0x1cb   : > { %v4083_v32 = vadd.f32 %v2732_v28, %v2668_v26  ;;  %v2670_v33 = vpop.f32.mrf.mxu0 }
 0x1cc   : > { %v2671_v34 = vadd.f32 %v2670_v33, %v2669_v29  ;;  %v2734_v35 = vpop.f32.mrf.mxu1 }
 0x1cd   : > { %v2735_v36 = vadd.f32 %v2734_v35, %v2733_v30  ;;  %v2672_v37 = vpop.f32.mrf.mxu0 }
 0x1ce   : > { %v2736_v39 = vpop.f32.mrf.mxu1 }
 0x1cf   : > { %v4085_v40 = vadd.f32 %v2735_v36, %v2671_v34  ;;  %v2673_v41 = vpop.f32.mrf.mxu0 }
 0x1d0   : > { %v2674_v42 = vadd.f32 %v2673_v41, %v2672_v37  ;;  %v2737_v43 = vpop.f32.mrf.mxu1 }
 0x1d1   : > { %v2738_v44 = vadd.f32 %v2737_v43, %v2736_v39  ;;  %v2675_v46 = vpop.f32.mrf.mxu0 }
 0x1d2   : > { %v2739_v47 = vpop.f32.mrf.mxu1 }
 0x1d3   : > { %v4087_v48 = vadd.f32 %v2738_v44, %v2674_v42  ;;  %v2676_v49 = vpop.f32.mrf.mxu0 }
 0x1d4   : > { %v2677_v50 = vadd.f32 %v2676_v49, %v2675_v46  ;;  %v2740_v51 = vpop.f32.mrf.mxu1 }
 0x1d5   : > { %v2741_v53 = vadd.f32 %v2740_v51, %v2739_v47  ;;  %v2678_v54 = vpop.f32.mrf.mxu0 }
 0x1d6   : > { %v2742_v55 = vpop.f32.mrf.mxu1 }
 0x1d7   : > { %v4089_v56 = vadd.f32 %v2741_v53, %v2677_v50  ;;  %v2679_v57 = vpop.f32.mrf.mxu0 }
 0x1d8   : > { %v2680_v58 = vadd.f32 %v2679_v57, %v2678_v54  ;;  %v2743_v60 = vpop.f32.mrf.mxu1 }
 0x1d9   : > { %v2744_v61 = vadd.f32 %v2743_v60, %v2742_v55  ;;  %v2681_v62 = vpop.f32.mrf.mxu0 }
 0x1da   : > { %v4091_v63 = vpop.f32.mrf.mxu1 }
 0x1db   : > { %v4093_v0 = vadd.f32 %v2744_v61, %v2680_v58  ;;  %v2682_v1 = vpop.f32.mrf.mxu0 }
 0x1dc   : > { %v4096_v4 = vadd.f32 %v2682_v1, %v2681_v62  ;;  %v4098_v5 = vpop.f32.mrf.mxu1 }
 0x1dd   : > { %v2764_v6 = vpop.f32.mrf.mxu0 }
 0x1de   : > { %v2828_v7 = vpop.f32.mrf.mxu1 }
 0x1df   : > { %v2765_v8 = vpop.f32.mrf.mxu0 }
 0x1e0   : > { %v2766_v10 = vadd.f32 %v2765_v8, %v2764_v6  ;;  %v2829_v11 = vpop.f32.mrf.mxu1 }
 0x1e1   : > { %v2767_v12 = vpop.f32.mrf.mxu0  ;;  %v2830_v13 = vadd.f32 %v2829_v11, %v2828_v7 }
 0x1e2   : > { %v1672_v14 = vadd.f32 %v2766_v10, %v4063_v24  ;;  %v2831_v15 = vpop.f32.mrf.mxu1 }
 0x1e3   : > { %v2768_v17 = vpop.f32.mrf.mxu0 }
 0x1e4   : > { %v2769_v18 = vadd.f32 %v2768_v17, %v2767_v12  ;;  %v2832_v19 = vpop.f32.mrf.mxu1  ;;  %v4101_v20 = vadd.f32 %v2830_v13, %v1672_v14 }
 0x1e5   : > { %v2770_v21 = vpop.f32.mrf.mxu0  ;;  %v2833_v22 = vadd.f32 %v2832_v19, %v2831_v15 }
 0x1e6   : > { %4372 = vst [vmem:[#allocation26_spill] sm:$0xff] %v4101_v20  ;;  %v1675_v25 = vadd.f32 %v2769_v18, %v4065_v31  ;;  %v2834_v26 = vpop.f32.mrf.mxu1 }
 0x1e7   : > { %v2771_v27 = vpop.f32.mrf.mxu0 }
 0x1e8   : > { %v2772_v28 = vadd.f32 %v2771_v27, %v2770_v21  ;;  %v2835_v29 = vpop.f32.mrf.mxu1  ;;  %v4104_v30 = vadd.f32 %v2833_v22, %v1675_v25 }
 0x1e9   : > { %v2773_v33 = vpop.f32.mrf.mxu0  ;;  %v2836_v34 = vadd.f32 %v2835_v29, %v2834_v26 }
 0x1ea   : > { %4373 = vst [vmem:[#allocation27_spill] sm:$0xff] %v4104_v30  ;;  %v1680_v24 = vadd.f32 %v2772_v28, %v4067_v38  ;;  %v2837_v35 = vpop.f32.mrf.mxu1 }
 0x1eb   : > { %v2774_v36 = vpop.f32.mrf.mxu0 }
 0x1ec   : > { %v2775_v37 = vadd.f32 %v2774_v36, %v2773_v33  ;;  %v2838_v39 = vpop.f32.mrf.mxu1  ;;  %v4107_v41 = vadd.f32 %v2836_v34, %v1680_v24 }
 0x1ed   : > { %v2776_v42 = vpop.f32.mrf.mxu0  ;;  %v2839_v43 = vadd.f32 %v2838_v39, %v2837_v35 }
 0x1ee   : > { %4374 = vst [vmem:[#allocation28_spill] sm:$0xff] %v4107_v41  ;;  %v1683_v31 = vadd.f32 %v2775_v37, %v4069_v45  ;;  %v2840_v44 = vpop.f32.mrf.mxu1 }
 0x1ef   : > { %v2777_v46 = vpop.f32.mrf.mxu0 }
 0x1f0   : > { %v2778_v47 = vadd.f32 %v2777_v46, %v2776_v42  ;;  %v2841_v49 = vpop.f32.mrf.mxu1  ;;  %v4110_v50 = vadd.f32 %v2839_v43, %v1683_v31 }
 0x1f1   : > { %v2779_v51 = vpop.f32.mrf.mxu0  ;;  %v2842_v53 = vadd.f32 %v2841_v49, %v2840_v44 }
 0x1f2   : > { %4375 = vst [vmem:[#allocation29_spill] sm:$0xff] %v4110_v50  ;;  %v1688_v38 = vadd.f32 %v2778_v47, %v4071_v52  ;;  %v4113_v54 = vpop.f32.mrf.mxu1 }
 0x1f3   : > { %v2780_v55 = vpop.f32.mrf.mxu0 }
 0x1f4   : > { %v2781_v57 = vadd.f32 %v2780_v55, %v2779_v51  ;;  %v4115_v58 = vpop.f32.mrf.mxu1  ;;  %v4117_v60 = vadd.f32 %v2842_v53, %v1688_v38 }
 0x1f5   : > { %v2782_v61 = vpop.f32.mrf.mxu0 }
 0x1f6   : > { %4376 = vst [vmem:[#allocation30_spill] sm:$0xff] %v4117_v60  ;;  %v4120_v45 = vadd.f32 %v2781_v57, %v4073_v59  ;;  %v4122_v62 = vpop.f32.mrf.mxu1 }
 0x1f7   : > { %v2783_v1 = vpop.f32.mrf.mxu0 }
 0x1f8   : > { %4377 = vst [vmem:[#allocation31_spill] sm:$0xff] %v4120_v45  ;;  %v2784_v3 = vadd.f32 %v2783_v1, %v2782_v61  ;;  %v4124_v6 = vpop.f32.mrf.mxu1 }
 0x1f9   : > { %v2785_v7 = vpop.f32.mrf.mxu0 }
 0x1fa   : > { %v4127_v52 = vadd.f32 %v2784_v3, %v4075_v2  ;;  %v4129_v8 = vpop.f32.mrf.mxu1 }
 0x1fb   : > { %v2786_v10 = vpop.f32.mrf.mxu0 }
 0x1fc   : > { %4378 = vst [vmem:[#allocation32_spill] sm:$0xff] %v4127_v52  ;;  %v2787_v11 = vadd.f32 %v2786_v10, %v2785_v7  ;;  %v4131_v12 = vpop.f32.mrf.mxu1 }
 0x1fd   : > { %v2788_v13 = vpop.f32.mrf.mxu0 }
 0x1fe   : > { %v4134_v59 = vadd.f32 %v2787_v11, %v4077_v9  ;;  %v4136_v14 = vpop.f32.mrf.mxu1 }
 0x1ff   : > { %v2789_v15 = vpop.f32.mrf.mxu0 }
 0x200   : > { %4379 = vst [vmem:[#allocation33_spill] sm:$0xff] %v4134_v59  ;;  %v2790_v17 = vadd.f32 %v2789_v15, %v2788_v13  ;;  %v4138_v18 = vpop.f32.mrf.mxu1  ;;  %v2747_v15 = vadd.f32 %v4098_v5, %v4091_v63 }
 0x201   : > { %v4140_v19 = vpop.f32.mrf.mxu0 }
 0x202   : > { %v4143_v2 = vadd.f32 %v2790_v17, %v4079_v16  ;;  %v4145_v21 = vpop.f32.mrf.mxu1 }
 0x203   : > { %v2792_v22 = vpop.f32.mrf.mxu0 }
 0x204   : > { %v4147_v25 = vpop.f32.mrf.mxu1 }
 0x205   : > { %v2794_v26 = vpop.f32.mrf.mxu0 }
 0x206   : > { %v4149_v27 = vpop.f32.mrf.mxu1 }
 0x207   : > { %v2795_v9 = vpop.f32.mrf.mxu0 }
 0x208   : > { %v4151_v29 = vpop.f32.mrf.mxu1 }
 0x209   : > { %v2797_v28 = vpop.f32.mrf.mxu0 }
 0x20a   : > { %v2861_v34 = vpop.f32.mrf.mxu1 }
 0x20b   : > { %v2798_v33 = vpop.f32.mrf.mxu0 }
 0x20c   : > { %v2862_v36 = vpop.f32.mrf.mxu1  ;;  %v2799_v52 = vadd.f32 %v2798_v33, %v2797_v28 }
 0x20d   : > { %v2800_v24 = vpop.f32.mrf.mxu0 }
 0x20e   : > { %v2864_v39 = vpop.f32.mrf.mxu1 }
 0x20f   : > { %v2801_v35 = vpop.f32.mrf.mxu0 }
 0x210   : > { %v2865_v31 = vpop.f32.mrf.mxu1  ;;  %v2802_v45 = vadd.f32 %v2801_v35, %v2800_v24  ;;  %v1715_v24 = vadd.f32 %v2799_v52, %v4085_v40 }
 0x211   : > { %v2803_v37 = vpop.f32.mrf.mxu0 }
 0x212   : > { %v2867_v47 = vpop.f32.mrf.mxu1 }
 0x213   : > { %v2804_v16 = vpop.f32.mrf.mxu0 }
 0x214   : > { %v2868_v53 = vpop.f32.mrf.mxu1 }
 0x215   : > { %v2806_v42 = vpop.f32.mrf.mxu0  ;;  %v2869_v5 = vadd.f32 %v2868_v53, %v2867_v47  ;;  %v4398_v53 = vld [vmem:[#allocation28_spill] sm:$0xff] }
 0x216   : > { %v2870_v57 = vpop.f32.mrf.mxu1 }
 0x217   : > { %v2807_v43 = vpop.f32.mrf.mxu0 }
 0x218   : > { %v2871_v3 = vpop.f32.mrf.mxu1 }
 0x219   : > { %v2809_v44 = vpop.f32.mrf.mxu0 }
 0x21a   : > { %v2873_v11 = vpop.f32.mrf.mxu1 }
 0x21b   : > { %v2810_v46 = vpop.f32.mrf.mxu0 }
 0x21c   : > { %v2874_v20 = vpop.f32.mrf.mxu1 }
 0x21d   : > { %v4153_v49 = vpop.f32.mrf.mxu0 }
 0x21e   : > { %4380 = vst [vmem:[#allocation34_spill] sm:$0xff] %v4153_v49  ;;  %v2808_v49 = vadd.f32 %v2807_v43, %v2806_v42  ;;  %v2866_v42 = vadd.f32 %v2865_v31, %v2864_v39  ;;  %v4396_v31 = vld [vmem:[#allocation29_spill] sm:$0xff] }
 0x21f   : > { %v4155_v51 = vpop.f32.mrf.mxu0 }
 0x220   : > { %4381 = vst [vmem:[#allocation35_spill] sm:$0xff] %v4155_v51  ;;  %v2811_v51 = vadd.f32 %v2810_v46, %v2809_v44  ;;  %v2796_v46 = vadd.f32 %v2795_v9, %v2794_v26 }
 0x221   : > { %v4157_v38 = vpop.f32.mrf.mxu0 }
 0x222   : > { %4382 = vst [vmem:[#allocation36_spill] sm:$0xff] %v4157_v38  ;;  %v2805_v38 = vadd.f32 %v2804_v16, %v2803_v37 }
 0x223   : > { %v4159_v55 = vpop.f32.mrf.mxu0 }
 0x224   : > { %4383 = vst [vmem:[#allocation37_spill] sm:$0xff] %v4159_v55  ;;  %v1634_v55 = vadd.f32 %v2747_v15, %v4096_v4  ;;  %v1723_v63 = vadd.f32 %v2805_v38, %v4089_v56  ;;  %v1720_v4 = vadd.f32 %v2802_v45, %v4087_v48  ;;  %v1712_v56 = vadd.f32 %v2796_v46, %v4083_v32  ;;  %v1931_v15 = vld [vmem:[%s3960_s26 + $0x18] sm:$0xff]  ;;  %v1936_v46 = vld [vmem:[%s3960_s26 + $0x40] sm:$0xff] }
 0x225   : > { %v4161_v61 = vpop.f32.mrf.mxu0  ;;  %v4399_v38 = vld [vmem:[#allocation34_spill] sm:$0xff] }
 0x226   : > { %4384 = vst [vmem:[#allocation38_spill] sm:$0xff] %v4161_v61  ;;  %v1731_v50 = vadd.f32 %v2811_v51, %v1634_v55  ;;  %v2872_v61 = vadd.f32 %v2871_v3, %v2870_v57  ;;  %v1817_v26 = vadd.f32 %v2866_v42, %v1720_v4  ;;  %v1874_v55 = vadd.f32 %v4399_v38, %v4398_v53  ;;  %v4400_v57 = vld [vmem:[#allocation27_spill] sm:$0xff]  ;;  %v4402_v3 = vld [vmem:[#allocation26_spill] sm:$0xff]  ;;  %v1938_v42 = vld [vmem:[%s3960_s26 + $0x50] sm:$0xff] }
 0x227   : > { %v4163_v1 = vpop.f32.mrf.mxu0  ;;  %v1937_v4 = vld [vmem:[%s3960_s26 + $0x48] sm:$0xff] }
 0x228   : > { %4385 = vst [vmem:[#allocation39_spill] sm:$0xff] %v4163_v1  ;;  %v2875_v1 = vadd.f32 %v2874_v20, %v2873_v11  ;;  %v2793_v20 = vadd.f32 %v2792_v22, %v4140_v19  ;;  %v2851_v22 = vadd.f32 %v4131_v12, %v4129_v8  ;;  %v4389_v8 = vld [vmem:[#allocation32_spill] sm:$0xff]  ;;  %v1929_v11 = vld [vmem:[%s3960_s26 + $0x8] sm:$0xff] }
 0x229   : > { %v4165_v7 = vpop.f32.mrf.mxu0  ;;  %v4397_v47 = vld [vmem:[#allocation36_spill] sm:$0xff] }
 0x22a   : > { %4386 = vst [vmem:[#allocation40_spill] sm:$0xff] %v4165_v7  ;;  %v1828_v44 = vadd.f32 %v2875_v1, %v1731_v50  ;;  %v2860_v50 = vadd.f32 %v4151_v29, %v4149_v27  ;;  %v1707_v45 = vadd.f32 %v2793_v20, %v4081_v23  ;;  %v2848_v23 = vadd.f32 %v4124_v6, %v4122_v62  ;;  %v1941_v20 = vld [vmem:[%s3960_s26 + $0x68] sm:$0xff] }
 0x22b   : > { %v4167_v10 = vpop.f32.mrf.mxu0  ;;  %v1877_v51 = vadd.f32 %v4397_v47, %v4396_v31 }
 0x22c   : > { %4387 = vst [vmem:[#allocation41_spill] sm:$0xff] %v4167_v10  ;;  %v1728_v10 = vadd.f32 %v2808_v49, %v4093_v0  ;;  %v2863_v0 = vadd.f32 %v2862_v36, %v2861_v34  ;;  %v1820_v49 = vadd.f32 %v2869_v5, %v1723_v63  ;;  %v1809_v32 = vadd.f32 %v2860_v50, %v1712_v56  ;;  %v1933_v63 = vld [vmem:[%s3960_s26 + $0x28] sm:$0xff]  ;;  %v1934_v5 = vld [vmem:[%s3960_s26 + $0x30] sm:$0xff]  ;;  %v2201_v50 = vld [vmem:[#allocation10 + $0x60] sm:$0xff] }
 0x22d   : > { %v2986_v13 = vpop.f32.mrf.mxu0  ;;  %v1793_v12 = vadd.f32 %v2848_v23, %v4389_v8  ;;  %v4391_v62 = vld [vmem:[#allocation38_spill] sm:$0xff]  ;;  %v2202_v56 = vld [vmem:[#allocation10 + $0x68] sm:$0xff] }
 0x22e   : > { %v1825_v43 = vadd.f32 %v2872_v61, %v1728_v10  ;;  %v1812_v40 = vadd.f32 %v2863_v0, %v1715_v24  ;;  %v1906_v27 = vadd.f32 %v2986_v13, %v1809_v32  ;;  %v4401_v61 = vld [vmem:[#allocation37_spill] sm:$0xff]  ;;  %v1930_v13 = vld [vmem:[%s3960_s26 + $0x10] sm:$0xff]  ;;  %v2193_v32 = vld [vmem:[#allocation10 + $0x20] sm:$0xff] }
 0x22f   : > { %v1897_v17 = vpop.f32.mrf.mxu0  ;;  %v1890_v6 = vadd.f32 %v4391_v62, %v1793_v12  ;;  %v1869_v1 = vadd.f32 %v4401_v61, %v4400_v57  ;;  %v1943_v24 = vld [vmem:[%s3960_s26 + $0x78] sm:$0xff]  ;;  %v2112_v0 = vld [vmem:[%s3981_s19] sm:$0xff] }
 0x230   : > { %3080 = vmatprep.mubr.f32.mxu0 %v2112_v0  ;;  %v2113_v0 = vld [vmem:[%s3981_s19 + $0x8] sm:$0xff] }
 0x231   : > { %v2987_v30 = vpop.f32.mrf.mxu0  ;;  %v4390_v29 = vld [vmem:[#allocation40_spill] sm:$0xff] }
 0x232   : > { %v1909_v19 = vadd.f32 %v2987_v30, %v1812_v40  ;;  %v2845_v30 = vadd.f32 %v4115_v58, %v4113_v54  ;;  %v4394_v54 = vld [vmem:[#allocation30_spill] sm:$0xff]  ;;  %v4395_v58 = vld [vmem:[#allocation39_spill] sm:$0xff]  ;;  %v2196_v40 = vld [vmem:[#allocation10 + $0x38] sm:$0xff] }
 0x233   : > { %v1900_v41 = vpop.f32.mrf.mxu0  ;;  %v4393_v34 = vld [vmem:[#allocation41_spill] sm:$0xff]  ;;  %v1882_v39 = vadd.f32 %v4395_v58, %v4394_v54 }
 0x235   : > { %v2990_v60 = vpop.f32.mrf.mxu0 }
 0x236   : > { %v1922_v35 = vadd.f32 %v2990_v60, %v1825_v43  ;;  %v2854_v60 = vadd.f32 %v4138_v18, %v4136_v14  ;;  %v4388_v14 = vld [vmem:[#allocation33_spill] sm:$0xff] }
 0x237   : > { %v1913_v7 = vpop.f32.mrf.mxu0  ;;  %v1796_v18 = vadd.f32 %v2851_v22, %v4388_v14  ;;  %v1939_v43 = vld [vmem:[%s3960_s26 + $0x58] sm:$0xff]  ;;  %v2191_v22 = vld [vmem:[#allocation10 + $0x10] sm:$0xff] }
 0x238   : > { %v1914_v52 = vadd.f32 %v1913_v7, %v1817_v26  ;;  %v4403_v7 = vld [vmem:[#allocation35_spill] sm:$0xff]  ;;  %v2200_v26 = vld [vmem:[#allocation10 + $0x58] sm:$0xff] }
 0x239   : > { %v2991_v59 = vpop.f32.mrf.mxu0  ;;  %v1893_v33 = vadd.f32 %v4390_v29, %v1796_v18  ;;  %v1866_v10 = vadd.f32 %v4403_v7, %v4402_v3 }
 0x23a   : > { %v1925_v37 = vadd.f32 %v2991_v59, %v1828_v44  ;;  %v2857_v59 = vadd.f32 %v4147_v25, %v4145_v21  ;;  %v1801_v21 = vadd.f32 %v2854_v60, %v4143_v2  ;;  %v4392_v2 = vld [vmem:[#allocation31_spill] sm:$0xff]  ;;  %v1935_v44 = vld [vmem:[%s3960_s26 + $0x38] sm:$0xff] }
 0x23b   : > { %v1916_v16 = vpop.f32.mrf.mxu0  ;;  %v2194_v60 = vld [vmem:[#allocation10 + $0x28] sm:$0xff] }
 0x23c   : > { %2992 = vmatprep.subr.mxu1 %v1925_v37  ;;  %v1917_v48 = vadd.f32 %v1916_v16, %v1820_v49  ;;  %v1804_v9 = vadd.f32 %v2857_v59, %v1707_v45  ;;  %v1898_v28 = vadd.f32 %v1897_v17, %v1801_v21  ;;  %v1932_v17 = vld [vmem:[%s3960_s26 + $0x20] sm:$0xff]  ;;  %v1942_v16 = vld [vmem:[%s3960_s26 + $0x70] sm:$0xff]  ;;  %v2198_v45 = vld [vmem:[#allocation10 + $0x48] sm:$0xff] }
 0x23d   : > { %2993 = vmatpush3.msra.mxu1 %v1925_v37  ;;  %v1940_v37 = vld [vmem:[%s3960_s26 + $0x60] sm:$0xff]  ;;  %v2203_v49 = vld [vmem:[#allocation10 + $0x70] sm:$0xff]  ;;  %s3547_s26 = sshll.u32 %s3661_s8, 4  ;;  %s3548_s26 = int_to_ptr.vmem [resolvable:$false] %s3547_s26 }
 0x23e   : > { %2994 = vmatprep.subr.mxu1 %v1922_v35  ;;  %v1901_v25 = vadd.f32 %v1900_v41, %v1804_v9  ;;  %v1788_v41 = vadd.f32 %v2845_v30, %v4392_v2  ;;  %v2197_v59 = vld [vmem:[#allocation10 + $0x40] sm:$0xff]  ;;  %s3549_s22 = scalar_lea.vmem %s3548_s26, 512  ;;  %p3550_p10 = scmp.lt.s32.totalorder %s4239_s1, %s3548_s26 }
 0x23f   : > { %2995 = vmatpush3.msra.mxu1 %v1922_v35  ;;  %v2204_v35 = vld [vmem:[#allocation10 + $0x78] sm:$0xff]  ;;  %p3551_p11 = scmp.lt.s32.totalorder %s3549_s22, %s3543_s16 }
 0x240   : > { %2996 = vmatprep.subr.mxu1 %v1917_v48  ;;  %v1885_v36 = vadd.f32 %v4393_v34, %v1788_v41 }
 0x241   : > { %2997 = vmatpush3.msra.mxu1 %v1917_v48  ;;  %v2199_v48 = vld [vmem:[#allocation10 + $0x50] sm:$0xff]  ;;  %p3552_p1 = por %p3551_p11, %p3550_p10 }
 0x242   : > { %2998 = vmatprep.subr.mxu1 %v1914_v52 }
 0x243   : > { %2999 = vmatpush3.msra.mxu1 %v1914_v52  ;;  %v2195_v52 = vld [vmem:[#allocation10 + $0x30] sm:$0xff]  ;;  %p3553_p7 = pnand %p3552_p1, %p3546_p12 }
 0x244   : > { %3000 = vmatprep.subr.mxu1 %v1909_v19 }
 0x245   : > { %3001 = vmatpush3.msra.mxu1 %v1909_v19  ;;  %v2192_v19 = vld [vmem:[#allocation10 + $0x18] sm:$0xff] }
 0x246   : > { %3002 = vmatprep.subr.mxu1 %v1906_v27 }
 0x247   : > { %3003 = vmatpush3.msra.mxu1 %v1906_v27 }
 0x248   : > { %3004 = vmatprep.subr.mxu1 %v1901_v25 }
 0x249   : > { %3005 = vmatpush3.msra.mxu1 %v1901_v25 }
 0x24a   : > { %3006 = vmatprep.subr.mxu1 %v1898_v28 }
 0x24b   : > { %3007 = vmatpush3.msra.mxu1 %v1898_v28 }
 0x24c   : > { %3008 = vmatprep.subr.mxu1 %v1893_v33 }
 0x24d   : > { %3009 = vmatpush3.msra.mxu1 %v1893_v33 }
 0x24e   : > { %3010 = vmatprep.subr.mxu1 %v1890_v6 }
 0x24f   : > { %3011 = vmatpush3.msra.mxu1 %v1890_v6  ;;  %v2610_v6 = vld [vmem:[%s4299_s3] ss:$0 sm:$0xff] }
 0x250   : > { %3012 = vmatprep.subr.mxu1 %v1885_v36 }
 0x251   : > { %3013 = vmatpush3.msra.mxu1 %v1885_v36 }
 0x252   : > { %3014 = vmatprep.subr.mxu1 %v1882_v39 }
 0x253   : > { %3015 = vmatpush3.msra.mxu1 %v1882_v39 }
 0x254   : > { %3016 = vmatprep.subr.mxu1 %v1877_v51 }
 0x255   : > { %3017 = vmatpush3.msra.mxu1 %v1877_v51 }
 0x256   : > { %3018 = vmatprep.subr.mxu1 %v1874_v55 }
 0x257   : > { %3019 = vmatpush3.msra.mxu1 %v1874_v55 }
 0x258   : > { %3020 = vmatprep.subr.mxu1 %v1869_v1 }
 0x259   : > { %3021 = vmatpush3.msra.mxu1 %v1869_v1 }
 0x25a   : > { %3022 = vmatprep.subr.mxu1 %v1866_v10 }
 0x25b   : > { %3023 = vmatpush3.msra.mxu1 %v1866_v10 }
 0x25c   : > { %3025 = vmatmul.mubr.f32.vlgmr.msra.gmra.mxu1 %v1929_v11  ;;  %3083 = vmatprep.subr.mxu1 %v2204_v35 }
 0x25d   : > { %3027 = vmatprep.mubr.f32.mxu1 %v1930_v13  ;;  %3084 = vmatpush3.msra.mxu1 %v2204_v35  ;;  %v2190_v35 = vld [vmem:[#allocation10 + $0x8] sm:$0xff] }
 0x25e   : > { %3085 = vmatprep.subr.mxu1 %v2203_v49 }
 0x25f   : > { %3086 = vmatpush3.msra.mxu1 %v2203_v49  ;;  %v2189_v49 = vld [vmem:[#allocation10] sm:$0xff] }
 0x260   : > { %3028 = vmatmul.mubr.f32.gmra.mxu1 %v1931_v15  ;;  %3087 = vmatprep.subr.mxu1 %v2202_v56 }
 0x261   : > { %3030 = vmatprep.mubr.f32.mxu1 %v1932_v17  ;;  %3088 = vmatpush3.msra.mxu1 %v2202_v56 }
 0x262   : > { %3089 = vmatprep.subr.mxu1 %v2201_v50 }
 0x263   : > { %3090 = vmatpush3.msra.mxu1 %v2201_v50 }
 0x264   : > { %3031 = vmatmul.mubr.f32.gmra.mxu1 %v1933_v63  ;;  %3091 = vmatprep.subr.mxu1 %v2200_v26 }
 0x265   : > { %3033 = vmatprep.mubr.f32.mxu1 %v1934_v5  ;;  %3092 = vmatpush3.msra.mxu1 %v2200_v26  ;;  %v2611_v26 = vld [vmem:[%s4302_s6] ss:$0 sm:$0xff] }
 0x266   : > { %3093 = vmatprep.subr.mxu1 %v2199_v48 }
 0x267   : > { %3094 = vmatpush3.msra.mxu1 %v2199_v48 }
 0x268   : > { %3034 = vmatmul.mubr.f32.gmra.mxu1 %v1935_v44  ;;  %3095 = vmatprep.subr.mxu1 %v2198_v45 }
 0x269   : > { %3036 = vmatprep.mubr.f32.mxu1 %v1936_v46  ;;  %3096 = vmatpush3.msra.mxu1 %v2198_v45 }
 0x26a   : > { %3097 = vmatprep.subr.mxu1 %v2197_v59 }
 0x26b   : > { %3098 = vmatpush3.msra.mxu1 %v2197_v59 }
 0x26c   : > { %3037 = vmatmul.mubr.f32.gmra.mxu1 %v1937_v4  ;;  %3099 = vmatprep.subr.mxu1 %v2196_v40 }
 0x26d   : > { %3039 = vmatprep.mubr.f32.mxu1 %v1938_v42  ;;  %3100 = vmatpush3.msra.mxu1 %v2196_v40 }
 0x26e   : > { %3101 = vmatprep.subr.mxu1 %v2195_v52 }
 0x26f   : > { %3102 = vmatpush3.msra.mxu1 %v2195_v52 }
 0x270   : > { %3040 = vmatmul.mubr.f32.gmra.mxu1 %v1939_v43  ;;  %3103 = vmatprep.subr.mxu1 %v2194_v60 }
 0x271   : > { %3042 = vmatprep.mubr.f32.mxu1 %v1940_v37  ;;  %3104 = vmatpush3.msra.mxu1 %v2194_v60 }
 0x272   : > { %3105 = vmatprep.subr.mxu1 %v2193_v32 }
 0x273   : > { %3106 = vmatpush3.msra.mxu1 %v2193_v32 }
 0x274   : > { %3043 = vmatmul.mubr.f32.gmra.mxu1 %v1941_v20  ;;  %3107 = vmatprep.subr.mxu1 %v2192_v19 }
 0x275   : > { %3045 = vmatprep.mubr.f32.mxu1 %v1942_v16  ;;  %3108 = vmatpush3.msra.mxu1 %v2192_v19 }
 0x276   : > { %3109 = vmatprep.subr.mxu1 %v2191_v22 }
 0x277   : > { %3110 = vmatpush3.msra.mxu1 %v2191_v22 }
 0x278   : > { %3046 = vmatmul.mubr.f32.gmra.mxu1 %v1943_v24  ;;  %3111 = vmatprep.subr.mxu1 %v2190_v35 }
 0x279   : > { %3112 = vmatpush3.msra.mxu1 %v2190_v35 }
 0x27a   : > { %3113 = vmatprep.subr.mxu1 %v2189_v49 }
 0x27b   : > { %3114 = vmatpush3.msra.mxu1 %v2189_v49 }
 0x31c   : > { %v4224_v27 = vpop.f32.mrf.mxu1 }
 0x31d   : > { %v2023_v42 = vadd.f32 %v4224_v27, %v2610_v6 }
 0x31e   : > { %v4226_v9 = vpop.f32.mrf.mxu1 }
 0x31f   : > { %v2018_v37 = vadd.f32 %v2610_v6, %v4226_v9  ;;  %v2097_v16 = vmax.f32 %v2023_v42, 0.0 }
 0x320   : > { %v3029_v23 = vpop.f32.mrf.mxu1 }
 0x321   : > { %v2033_v5 = vadd.f32 %v3029_v23, %v2610_v6  ;;  %v2096_v24 = vmax.f32 %v2018_v37, 0.0 }
 0x322   : > { %v2027_v21 = vpop.f32.mrf.mxu1 }
 0x323   : > { %v2028_v46 = vadd.f32 %v2610_v6, %v2027_v21  ;;  %v2099_v43 = vmax.f32 %v2033_v5, 0.0 }
 0x324   : > { %v3032_v25 = vpop.f32.mrf.mxu1 }
 0x325   : > { %v2043_v13 = vadd.f32 %v3032_v25, %v2610_v6  ;;  %v2098_v20 = vmax.f32 %v2028_v46, 0.0 }
 0x326   : > { %v2037_v30 = vpop.f32.mrf.mxu1 }
 0x327   : > { %v2038_v17 = vadd.f32 %v2610_v6, %v2037_v30  ;;  %v2101_v44 = vmax.f32 %v2043_v13, 0.0 }
 0x328   : > { %v3035_v14 = vpop.f32.mrf.mxu1 }
 0x329   : > { %v2053_v3 = vadd.f32 %v3035_v14, %v2610_v6  ;;  %v2100_v4 = vmax.f32 %v2038_v17, 0.0 }
 0x32a   : > { %v2047_v18 = vpop.f32.mrf.mxu1 }
 0x32b   : > { %v2048_v10 = vadd.f32 %v2610_v6, %v2047_v18  ;;  %v2103_v15 = vmax.f32 %v2053_v3, 0.0 }
 0x32c   : > { %v3038_v28 = vpop.f32.mrf.mxu1 }
 0x32d   : > { %v2063_v55 = vadd.f32 %v3038_v28, %v2610_v6  ;;  %v2102_v63 = vmax.f32 %v2048_v10, 0.0 }
 0x32e   : > { %v2057_v8 = vpop.f32.mrf.mxu1 }
 0x32f   : > { %v2058_v61 = vadd.f32 %v2610_v6, %v2057_v8  ;;  %v2105_v7 = vmax.f32 %v2063_v55, 0.0 }
 0x330   : > { %v3041_v12 = vpop.f32.mrf.mxu1 }
 0x331   : > { %v2073_v47 = vadd.f32 %v3041_v12, %v2610_v6  ;;  %v2104_v11 = vmax.f32 %v2058_v61, 0.0 }
 0x332   : > { %v2067_v29 = vpop.f32.mrf.mxu1 }
 0x333   : > { %v2068_v53 = vadd.f32 %v2610_v6, %v2067_v29  ;;  %v2107_v57 = vmax.f32 %v2073_v47, 0.0 }
 0x334   : > { %v3044_v33 = vpop.f32.mrf.mxu1 }
 0x335   : > { %v2083_v36 = vadd.f32 %v3044_v33, %v2610_v6  ;;  %v2106_v1 = vmax.f32 %v2068_v53, 0.0 }
 0x336   : > { %v2077_v62 = vpop.f32.mrf.mxu1 }
 0x337   : > { %v2078_v39 = vadd.f32 %v2610_v6, %v2077_v62  ;;  %v2109_v51 = vmax.f32 %v2083_v36, 0.0 }
 0x338   : > { %v3047_v2 = vpop.f32.mrf.mxu1 }
 0x339   : > { %v2093_v41 = vadd.f32 %v3047_v2, %v2610_v6  ;;  %v2108_v38 = vmax.f32 %v2078_v39, 0.0 }
 0x33a   : > { %v2087_v34 = vpop.f32.mrf.mxu1 }
 0x33b   : > { %v2111_v54 = vmax.f32 %v2093_v41, 0.0  ;;  %v2088_v58 = vadd.f32 %v2610_v6, %v2087_v34 }
 0x33d   : > { %v2110_v31 = vmax.f32 %v2088_v58, 0.0  ;;  %3048 = vmatprep.subr.mxu0 %v2111_v54 }
 0x33e   : > { %3049 = vmatpush3.msra.mxu0 %v2111_v54 }
 0x33f   : > { %3050 = vmatprep.subr.mxu0 %v2110_v31 }
 0x340   : > { %3051 = vmatpush3.msra.mxu0 %v2110_v31 }
 0x341   : > { %3052 = vmatprep.subr.mxu0 %v2109_v51 }
 0x342   : > { %3053 = vmatpush3.msra.mxu0 %v2109_v51 }
 0x343   : > { %3054 = vmatprep.subr.mxu0 %v2108_v38 }
 0x344   : > { %3055 = vmatpush3.msra.mxu0 %v2108_v38 }
 0x345   : > { %3056 = vmatprep.subr.mxu0 %v2107_v57 }
 0x346   : > { %3057 = vmatpush3.msra.mxu0 %v2107_v57 }
 0x347   : > { %3058 = vmatprep.subr.mxu0 %v2106_v1 }
 0x348   : > { %3059 = vmatpush3.msra.mxu0 %v2106_v1 }
 0x349   : > { %3060 = vmatprep.subr.mxu0 %v2105_v7 }
 0x34a   : > { %3061 = vmatpush3.msra.mxu0 %v2105_v7 }
 0x34b   : > { %3062 = vmatprep.subr.mxu0 %v2104_v11 }
 0x34c   : > { %3063 = vmatpush3.msra.mxu0 %v2104_v11 }
 0x34d   : > { %3064 = vmatprep.subr.mxu0 %v2103_v15 }
 0x34e   : > { %3065 = vmatpush3.msra.mxu0 %v2103_v15 }
 0x34f   : > { %3066 = vmatprep.subr.mxu0 %v2102_v63 }
 0x350   : > { %3067 = vmatpush3.msra.mxu0 %v2102_v63 }
 0x351   : > { %3068 = vmatprep.subr.mxu0 %v2101_v44 }
 0x352   : > { %3069 = vmatpush3.msra.mxu0 %v2101_v44 }
 0x353   : > { %3070 = vmatprep.subr.mxu0 %v2100_v4 }
 0x354   : > { %3071 = vmatpush3.msra.mxu0 %v2100_v4 }
 0x355   : > { %3072 = vmatprep.subr.mxu0 %v2099_v43 }
 0x356   : > { %3073 = vmatpush3.msra.mxu0 %v2099_v43 }
 0x357   : > { %3074 = vmatprep.subr.mxu0 %v2098_v20 }
 0x358   : > { %3075 = vmatpush3.msra.mxu0 %v2098_v20 }
 0x359   : > { %3076 = vmatprep.subr.mxu0 %v2097_v16 }
 0x35a   : > { %3077 = vmatpush3.msra.mxu0 %v2097_v16 }
 0x35b   : > { %3078 = vmatprep.subr.mxu0 %v2096_v24 }
 0x35c   : > { %3079 = vmatpush3.msra.mxu0 %v2096_v24 }
 0x35d   : > { %3081 = vmatmul.mubr.f32.vlgmr.msra.gmra.mxu0 %v2113_v0 }
 0x41d   : > { %v3082_v56 = vpop.f32.mrf.mxu0 }
 0x41f   : > { %v2180_v50 = vpop.f32.mrf.mxu0 }
 0x420   : > { %3115 = vmatprep.mubr.f32.mxu1 %v2180_v50 }
 0x421   : > { %3116 = vmatmul.mubr.f32.vlgmr.msra.gmra.mxu1 %v3082_v56 }
 0x4e1   : > { %v3117_v48 = vpop.f32.mrf.mxu1 }
 0x4e2   : > { %v2284_v45 = vadd.f32 %v3117_v48, %v2611_v26 }
 0x4e3   : > { %v2278_v59 = vpop.f32.mrf.mxu1 }
 0x4e4   : > { %2288 = vst [vmem:[%s413_s12 + $0x8] sm:$0xff] %v2284_v45  ;;  %v2279_v40 = vadd.f32 %v2611_v26, %v2278_v59 }
 0x4e6   : > { %2287 = vst [vmem:[%s413_s12] sm:$0xff] %v2279_v40 }
 0x4e7   : > { %3556 = shalt.err (!%p3553_p7)
}
 0x4e8   : > { %s3557_s13 = scalar_lea.hbm %s4244_s18, 256  ;;  %s3561_s14 = scalar_lea.hbm %s4405_s5, 512 }
 0x4e9   : > { %p3558_p2 = scmp.ne.s32.totalorder %s4244_s18, %s3557_s13  ;;  %p3562_p8 = scmp.lt.s32.totalorder %s4244_s18, %s4405_s5 }
 0x4ea   : > { %p3563_p0 = scmp.lt.s32.totalorder %s3561_s14, %s3557_s13 }
 0x4eb   : > { %p3559_p13 = pnand %p3558_p2, %p4406_p6 }
 0x4ec   : > { %p3564_p5 = por %p3563_p0, %p3562_p8 }
 0x4ed   : > { %p3560_p4 = pneg %p3559_p13 }
 0x4ef   : > { %p3565_p3 = pnand %p3564_p5, %p3560_p4 }
 0x4f1   : > { %3568 = shalt.err (!%p3565_p3)
}
 0x4f2   : > { %s3662_s10 = smov 128   ;;  %s3663_s11 = smov 8  }
 0x4f3   : > { %3135 = dma.vmem_to_hbm [thread:$0]  (%p4406_p6), %s4239_s1, 256, %s4244_s18, %s2290_s20, %s3662_s10, %s3662_s10, %s3663_s11  }
 0x4f4 PF: > { %s4407_s23 = sld [smem:[#allocation18_spill]]  ;;  %p4410_p12 = scmp.ge.s32.totalorder %s3647_s30, 2 }
 0x4f5   : > { %s4408_s27 = sld [smem:[#allocation21_spill]] }
 0x4fa   : > { %s2318_s21 = sand.u32 1, %s4407_s23  }
 0x4fb   : > { %p4409_p9 = scmp.ne.s32.totalorder %s4408_s27, 0  ;;  %s2319_s12 = scalar_lea.sflag [#allocation4], %s2318_s21 }
 0x4fd   : > { %p3155_p10 = pnand %p4410_p12, %p4409_p9 }
 0x4ff   : > { %p3156_p11 = pneg %p3155_p10 }
 0x501   : > { %3618 = dma.done.wait (%p3156_p11), %s2319_s12, 256  }
 0x502   : > { %3620 = vsyncadd (%p3156_p11), %s2319_s12, 4294967040  ;;  %s4411_s30 = sld [smem:[#allocation22_spill]]  ;;  %s4416_s24 = smov %s3627_s25 }
 0x503   : > { %s4412_s7 = sld [smem:[#allocation19_spill]]  ;;  %s4418_s27 = smov %s3639_s28 }
 0x504   : > { %s4413_s26 = sld [smem:[#allocation24_spill]] }
 0x505   : > { %s4414_s0 = sld [smem:[#allocation20_spill]] }
 0x506   : > { %s4415_s29 = sld [smem:[#allocation23_spill]] }
 0x508   : > { %p26_p6 = scmp.ge.s32.totalorder %s4411_s30, 4  }
 0x509   : > { %s4417_s25 = smov %s4412_s7 }
 0x50a   :  { %28 = sbr.rel (!%p26_p6) target bundleno = 17 (0x11), region = 127 }
 0x50b   : > { %s4419_s28 = smov %s4414_s0 }
 0x50f   :  { %2324 = vsyncpa [#allocation3], 1 }
 0x510   :  { %2326 = vsyncpa [#allocation3 + $0x1], 1 }
 0x511   :  { %2327 = vsyncpa [#allocation6], 1 }
 0x512   :  { %2329 = vsyncpa [#allocation6 + $0x1], 1 }
 0x513   :  { %2330 = vsyncpa [#allocation9], 1 }
 0x514   :  { %2332 = vsyncpa [#allocation9 + $0x1], 1 }
 0x515   :  { %2333 = vsyncpa [#allocation4], 1 }
 0x516   :  { %2335 = vsyncpa [#allocation4 + $0x1], 1 }

</bundles_post_ra>
